<compile_context>
chip_gen: v7x
topology: tpu7x:2x2x1
jax: 0.10.0
libtpu: 0.0.40
codegen_flags: <defaults>
</compile_context>

<pallas_src>
import jax
import jax.numpy as jnp
from jax import lax
from jax.experimental import pallas as pl
from jax.experimental.pallas import tpu as pltpu


def _round_up(x, m):
    return ((x + m - 1) // m) * m


def _pick_tile(dim, cap, align):
    """Largest t <= cap with dim % t == 0 and t % align == 0."""
    cap = max(min(cap, dim), 1)
    for t in range(cap, 0, -1):
        if dim % t == 0 and t % align == 0:
            return t
    # Unreachable for our call sites (align always divides dim); stay bounded anyway.
    return align if dim % align == 0 else dim


def _vmem_limit_bytes():
    """Per-generation scoped-VMEM budget: conservative on v7x (64 MiB physical VMEM),
    generous on v5e/v6e (128 MiB physical)."""
    try:
        kind = jax.devices()[0].device_kind.lower()
    except Exception:
        kind = ""
    if "v7" in kind:
        return 48 * 1024 * 1024
    if "v5" in kind or "v6" in kind:
        return 96 * 1024 * 1024
    return 48 * 1024 * 1024


# ---------------------------------------------------------------------------
# GRU layer kernel (input projection fused; time-chunked recurrence)
# ---------------------------------------------------------------------------
def _make_gru_kernel(Hp, TB, TS, in_pad, has_proj, unroll):
    """One GRU layer over a (TS timesteps, TB batch rows) chunk.

    torch.nn.GRU semantics (gate order r, z, n):
        r = sigmoid(gi_r + gh_r)            (b_ir + b_hr folded into gi_r)
        z = sigmoid(gi_z + gh_z)            (b_iz + b_hz folded into gi_z)
        n = tanh  (gi_n + r * (gh_n + b_hn))
        h = (1 - z) * n + z * h
    """

    def recurrence(read_gi, whh_ref, bhn_ref, out_ref, hT_ref):
        # First time chunk of this batch block: zero initial state (nn.GRU default),
        # no h0 DMA needed.
        @pl.when(pl.program_id(1) == 0)
        def _():
            hT_ref[...] = jnp.zeros_like(hT_ref)

        # Hoisted loads / broadcasts (not re-emitted every timestep).
        whh = whh_ref[...]                                   # (Hp, 3Hp) bf16, resident
        bhn = jnp.broadcast_to(bhn_ref[...], (TB, Hp))       # (TB, Hp) f32, n-gate only

        def step(t, h):
            gi = read_gi(t)                                  # (TB, 3Hp) f32
            gh = jnp.dot(h.astype(jnp.bfloat16), whh,
                         preferred_element_type=jnp.float32)
            r = jax.nn.sigmoid(gi[:, 0:Hp] + gh[:, 0:Hp])
            z = jax.nn.sigmoid(gi[:, Hp:2 * Hp] + gh[:, Hp:2 * Hp])
            n = jnp.tanh(gi[:, 2 * Hp:] + r * (gh[:, 2 * Hp:] + bhn))
            h_new = (1.0 - z) * n + z * h
            out_ref[t] = h_new.astype(out_ref.dtype)         # bf16 for hidden layers
            return h_new

        # h is loop-carried (registers) within the chunk; the resident hT output block
        # carries it across time chunks.  Partial unroll keeps LLO visibility without
        # spilling the 64-vreg file at large TS.
        hT_ref[...] = lax.fori_loop(0, TS, step, hT_ref[...], unroll=unroll)

    if has_proj:
        def kernel(x_ref, wih_ref, bih_ref, whh_ref, bhn_ref,
                   out_ref, hT_ref, x2_ref, gi_ref):
            # Flatten (TS, TB, in) -> (TS*TB, in) via cheap static VMEM copies
            # (layout-safe: each (TB, in) slab is a whole number of bf16 tiles), then
            # ONE chunk-wide MXU matmul projects all TS timesteps at once.  Only the
            # (TB, Hp) @ (Hp, 3Hp) hidden matmul remains on the serial critical path.
            for t in range(TS):                              # static unroll, copies only
                x2_ref[t * TB:(t + 1) * TB, :] = x_ref[t]
            gi_ref[...] = (jnp.dot(x2_ref[...], wih_ref[...],
                                   preferred_element_type=jnp.float32)
                           + bih_ref[...])

            def read_gi(t):
                row = pl.multiple_of(t * TB, TB)
                return gi_ref[pl.ds(row, TB), :]

            recurrence(read_gi, whh_ref, bhn_ref, out_ref, hT_ref)

        return kernel

    def kernel(gi_ref, whh_ref, bhn_ref, out_ref, hT_ref):
        # Layer 0: gi was gathered from the pre-multiplied (V, 3Hp) embedding table.
        recurrence(lambda t: gi_ref[t].astype(jnp.float32),
                   whh_ref, bhn_ref, out_ref, hT_ref)

    return kernel


def _gru_layer(x, whh, bhn, *, wih, bih, Hp, out_dtype, vmem_limit, ts_cap=32):
    """x: (S, Bp, feat) bf16.  feat = 3Hp when the projection is pre-applied (wih is
    None), else the lane-padded layer input width.
    Returns (out (S, Bp, Hp) out_dtype, hT (Bp, Hp) f32)."""
    S, Bp, feat = x.shape
    has_proj = wih is not None

    # Batch tile: >=2 blocks whenever the batch allows it so the "parallel" axis can
    # split across TensorCores (v7x); otherwise grow toward 256 rows per MXU push.
    tb_cap = 256
    if Bp >= 32:
        tb_cap = min(tb_cap, Bp // 2)
    TB = _pick_tile(Bp, tb_cap, 16)

    # Time chunk: largest TS that fits the VMEM budget (double-buffered x/out chunks +
    # the flatten/gi scratch + resident weights), capped to bound per-chunk unrolling.
    out_bytes = jnp.dtype(out_dtype).itemsize
    fixed = (feat * 3 * Hp + Hp * 3 * Hp) * 2 * 2 + TB * Hp * 4 * 2     # weights + hT
    per_t = TB * (2 * feat * x.dtype.itemsize + 2 * Hp * out_bytes)      # x + out chunks
    if has_proj:
        per_t += TB * (3 * Hp * 4 + feat * 2)                            # gi + x2 scratch
    budget = max(vmem_limit // 2 - fixed, per_t)
    TS = _pick_tile(S, min(ts_cap, max(1, budget // per_t)), 1)
    unroll = max(1, min(TS, 8))

    kernel = _make_gru_kernel(Hp, TB, TS, feat, has_proj, unroll)

    in_specs = [pl.BlockSpec((TS, TB, feat), lambda b, s: (s, b, 0))]     # input chunk
    operands = [x]
    scratch = []
    if has_proj:
        in_specs += [pl.BlockSpec((feat, 3 * Hp), lambda b, s: (0, 0)),   # wih resident
                     pl.BlockSpec((1, 3 * Hp), lambda b, s: (0, 0))]      # b_ih (folded)
        operands += [wih, bih]
        scratch = [pltpu.VMEM((TS * TB, feat), jnp.bfloat16),             # flattened x
                   pltpu.VMEM((TS * TB, 3 * Hp), jnp.float32)]            # chunk gi
    in_specs += [pl.BlockSpec((Hp, 3 * Hp), lambda b, s: (0, 0)),         # whh resident
                 pl.BlockSpec((1, Hp), lambda b, s: (0, 0))]              # b_hn
    operands += [whh, bhn]

    out, hT = pl.pallas_call(
        kernel,
        grid=(Bp // TB, S // TS),
        in_specs=in_specs,
        out_specs=(pl.BlockSpec((TS, TB, Hp), lambda b, s: (s, b, 0)),    # hidden seq
                   pl.BlockSpec((TB, Hp), lambda b, s: (b, 0))),          # final hidden
        out_shape=(jax.ShapeDtypeStruct((S, Bp, Hp), out_dtype),
                   jax.ShapeDtypeStruct((Bp, Hp), jnp.float32)),
        scratch_shapes=scratch,
        compiler_params=pltpu.CompilerParams(
            dimension_semantics=("parallel", "arbitrary"),
            vmem_limit_bytes=vmem_limit),
    )(*operands)
    return out, hT


# ---------------------------------------------------------------------------
# Parameter preparation: PyTorch layout -> lane-aligned, transposed, bf16
# ---------------------------------------------------------------------------
def _prepare_params(params, num_layers, num_hiddens, embed_size):
    """Repack torch GRU weights:
       - transpose to (in, 3Hp) for right-multiplication, gate-major columns r|z|n,
       - zero-pad H -> Hp so gate slices are 128-lane aligned,
       - fold b_hr/b_hz into b_ih (always summed before the sigmoids), keep b_hn,
       - pre-multiply the embedding through layer 0's input projection into a (V, 3Hp)
         table so layer 0's gi becomes a gather (removes the K=E matmul entirely).
    """
    H = num_hiddens
    Hp = _round_up(H, 128)
    bf = jnp.bfloat16

    def pack_w(w, cols, cols_pad):
        w3 = w.reshape(3, H, cols)
        w3 = jnp.pad(w3, ((0, 0), (0, Hp - H), (0, cols_pad - cols)))
        return jnp.transpose(w3, (2, 0, 1)).reshape(cols_pad, 3 * Hp)

    def fold_biases(bih, bhh):
        bi3 = bih.reshape(3, H)
        bh3 = bhh.reshape(3, H)
        folded = jnp.concatenate([bi3[:2] + bh3[:2], bi3[2:]], axis=0)    # r,z folded
        folded = jnp.pad(folded, ((0, 0), (0, Hp - H))).reshape(1, 3 * Hp)
        bhn = jnp.pad(bh3[2:], ((0, 0), (0, Hp - H)))                     # (1, Hp)
        return folded.astype(jnp.float32), bhn.astype(jnp.float32)

    prepped = {}
    for l in range(num_layers):
        prepped[f"whh_{l}"] = pack_w(params[f"weight_hh_l{l}"], H, Hp).astype(bf)
        bih_f, bhn = fold_biases(params[f"bias_ih_l{l}"], params[f"bias_hh_l{l}"])
        prepped[f"bhn_{l}"] = bhn
        if l == 0:
            wih0 = pack_w(params["weight_ih_l0"], embed_size, embed_size).astype(bf)
            # One-time (V, 3Hp) precompute with the same bf16-operand / f32-accumulate
            # policy as the kernel, so the gathered gi matches an explicit projection.
            table = jnp.dot(params["embedding"].astype(bf), wih0,
                            preferred_element_type=jnp.float32) + bih_f
            prepped["gi0_table"] = table.astype(bf)
        else:
            prepped[f"wih_{l}"] = pack_w(params[f"weight_ih_l{l}"], H, Hp).astype(bf)
            prepped[f"bih_{l}"] = bih_f
    return prepped


# ---------------------------------------------------------------------------
# MenmaEncoder.forward
# ---------------------------------------------------------------------------
def menma_encoder_forward(tokens, params, *, num_layers, num_hiddens, embed_size):
    """tokens (B, S) int32 -> (output (S, B, H) f32, state (L, B, H) f32)."""
    B, S = tokens.shape
    H, L = num_hiddens, num_layers
    Hp = _round_up(H, 128)
    Bp = _round_up(B, 16)
    vmem_limit = _vmem_limit_bytes()

    pp = _prepare_params(params, L, H, embed_size)

    # Layer-0 projection folded into the embedding: gi0 = table[tokens].
    # TODO(synk): embedding gather + permute(1,0,2) kept in XLA (pure gather/layout glue).
    gi0 = jnp.take(pp["gi0_table"], tokens, axis=0)          # (B, S, 3Hp) bf16
    gi0 = jnp.transpose(gi0, (1, 0, 2))                      # (S, B, 3Hp) time-major
    gi0 = jnp.pad(gi0, ((0, 0), (0, Bp - B), (0, 0)))        # pad batch to 16 sublanes

    x = gi0
    finals = []
    out = None
    for l in range(L):
        last = (l == L - 1)
        out, hT = _gru_layer(
            x, pp[f"whh_{l}"], pp[f"bhn_{l}"],
            wih=None if l == 0 else pp[f"wih_{l}"],
            bih=None if l == 0 else pp[f"bih_{l}"],
            Hp=Hp,
            out_dtype=jnp.float32 if last else jnp.bfloat16,
            vmem_limit=vmem_limit)
        finals.append(hT)
        x = out                                              # bf16 feeds the next layer

    output = out[:, :B, :H]                                  # (S, B, H) f32
    state = jnp.stack(finals, axis=0)[:, :B, :H]             # (L, B, H) f32
    return output, state


# ---------------------------------------------------------------------------
# Synthetic parameters (PyTorch conventions) and pure-JAX reference
# ---------------------------------------------------------------------------
def init_params(key, vocab_size, embed_size, num_hiddens, num_layers):
    H, E, V = num_hiddens, embed_size, vocab_size
    params = {}
    k, sub = jax.random.split(key)
    params["embedding"] = jax.random.normal(sub, (V, E), jnp.float32) * 0.1
    for l in range(num_layers):
        in_dim = E if l == 0 else H
        k, k1, k2, k3, k4 = jax.random.split(k, 5)
        params[f"weight_ih_l{l}"] = jax.random.normal(k1, (3 * H, in_dim), jnp.float32) * 0.1
        params[f"weight_hh_l{l}"] = jax.random.normal(k2, (3 * H, H), jnp.float32) * 0.1
        params[f"bias_ih_l{l}"] = jax.random.normal(k3, (3 * H,), jnp.float32) * 0.1
        params[f"bias_hh_l{l}"] = jax.random.normal(k4, (3 * H,), jnp.float32) * 0.1
    return params


def _mm(a, w):
    # Mirror the kernel's dtype policy: bf16 operands, f32 accumulation.
    return jnp.dot(a.astype(jnp.bfloat16), w.astype(jnp.bfloat16),
                   preferred_element_type=jnp.float32)


def reference_forward(tokens, params, *, num_layers, num_hiddens):
    """Pure-JAX reference mirroring torch.nn.GRU semantics (r, z, n gate order)."""
    H, L = num_hiddens, num_layers
    x = jnp.transpose(params["embedding"][tokens], (1, 0, 2))   # (S, B, E)
    S, B, _ = x.shape
    hs = [jnp.zeros((B, H), jnp.float32) for _ in range(L)]
    wih_t = [params[f"weight_ih_l{l}"].T for l in range(L)]
    whh_t = [params[f"weight_hh_l{l}"].T for l in range(L)]
    outs = []
    for t in range(S):
        inp = x[t]
        for l in range(L):
            gi = _mm(inp, wih_t[l]) + params[f"bias_ih_l{l}"]
            gh = _mm(hs[l], whh_t[l]) + params[f"bias_hh_l{l}"]
            r = jax.nn.sigmoid(gi[:, :H] + gh[:, :H])
            z = jax.nn.sigmoid(gi[:, H:2 * H] + gh[:, H:2 * H])
            n = jnp.tanh(gi[:, 2 * H:] + r * gh[:, 2 * H:])
            hs[l] = (1.0 - z) * n + z * hs[l]
            inp = hs[l]
        outs.append(inp)
    return jnp.stack(outs, axis=0), jnp.stack(hs, axis=0)


if __name__ == "__main__":
    vocab_size, embed_size, num_hiddens, num_layers = 40, 16, 32, 2
    batch, seq = 2, 8

    key = jax.random.PRNGKey(0)
    k_tok, k_param = jax.random.split(key)
    tokens = jax.random.randint(k_tok, (batch, seq), 0, vocab_size, jnp.int32)
    params = init_params(k_param, vocab_size, embed_size, num_hiddens, num_layers)

    output, state = menma_encoder_forward(
        tokens, params, num_layers=num_layers, num_hiddens=num_hiddens,
        embed_size=embed_size)
    jax.block_until_ready((output, state))

    ref_out, ref_state = reference_forward(
        tokens, params, num_layers=num_layers, num_hiddens=num_hiddens)

    assert output.shape == (seq, batch, num_hiddens)
    assert state.shape == (num_layers, batch, num_hiddens)
    # bf16 matmul operands / bf16 inter-layer activations -> loosened tolerances
    # (the reference mirrors the same policy).
    assert jnp.allclose(output, ref_out, atol=2e-2, rtol=2e-2), \
        float(jnp.max(jnp.abs(output - ref_out)))
    assert jnp.allclose(state, ref_state, atol=2e-2, rtol=2e-2), \
        float(jnp.max(jnp.abs(state - ref_state)))

    print("KERNEL_OK")
</pallas_src>

<mosaic_0001>
module attributes {stable_mosaic.version = 11 : i64} {
  func.func @kernel(%arg0: i32, %arg1: i32, %arg2: memref<8x16x384xbf16, #tpu.memory_space<vmem>>, %arg3: memref<128x384xbf16, #tpu.memory_space<vmem>>, %arg4: memref<1x128xf32, #tpu.memory_space<vmem>>, %arg5: memref<8x16x128xbf16, #tpu.memory_space<vmem>>, %arg6: memref<16x128xf32, #tpu.memory_space<vmem>>) attributes {dimension_semantics = [#tpu.dimension_semantics<parallel>, #tpu.dimension_semantics<arbitrary>], iteration_bounds = array<i64: 1, 1>, scalar_prefetch = 0 : i64, scratch_operands = 0 : i64, tpu.core_type = #tpu.core_type<tc>, window_params = [{transform_indices = @transform_0, window_bounds = array<i64: 8, 16, 384>}, {pipeline_mode = #tpu.pipeline_mode<synchronous>, transform_indices = @transform_1, window_bounds = array<i64: 128, 384>}, {pipeline_mode = #tpu.pipeline_mode<synchronous>, transform_indices = @transform_2, window_bounds = array<i64: 1, 128>}, {transform_indices = @transform_3, window_bounds = array<i64: 8, 16, 128>}, {transform_indices = @transform_4, window_bounds = array<i64: 16, 128>}]} {
    %c0_i32 = arith.constant 0 : i32
    %0 = arith.cmpi eq, %arg1, %c0_i32 : i32
    %1 = arith.extui %0 : i1 to i32
    %c0_i32_0 = arith.constant 0 : i32
    %2 = arith.cmpi ne, %1, %c0_i32_0 : i32
    scf.if %2 {
      %cst_72 = arith.constant 0.000000e+00 : f32
      %313 = vector.broadcast %cst_72 : f32 to vector<16x128xf32>
      %c0_73 = arith.constant 0 : index
      %c0_74 = arith.constant 0 : index
      %314 = vector.load %arg6[%c0_73, %c0_74] : memref<16x128xf32, #tpu.memory_space<vmem>>, vector<16x128xf32>
      tpu.vector_store %arg6[%c0_73, %c0_74], %313 {strides = array<i32>} : memref<16x128xf32, #tpu.memory_space<vmem>>, vector<16x128xf32>,
    } else {
    }
    %c0 = arith.constant 0 : index
    %c0_1 = arith.constant 0 : index
    %3 = vector.load %arg3[%c0, %c0_1] : memref<128x384xbf16, #tpu.memory_space<vmem>>, vector<128x384xbf16>
    %c0_2 = arith.constant 0 : index
    %c0_3 = arith.constant 0 : index
    %4 = vector.load %arg4[%c0_2, %c0_3] : memref<1x128xf32, #tpu.memory_space<vmem>>, vector<1x128xf32>
    %5 = vector.shape_cast %4 : vector<1x128xf32> to vector<1x128xf32>
    %6 = vector.broadcast %5 : vector<1x128xf32> to vector<16x128xf32>
    %c0_4 = arith.constant 0 : index
    %c0_5 = arith.constant 0 : index
    %7 = vector.load %arg6[%c0_4, %c0_5] : memref<16x128xf32, #tpu.memory_space<vmem>>, vector<16x128xf32>
    %c0_i32_6 = arith.constant 0 : i32
    %8 = arith.index_cast %c0_i32_6 : i32 to index
    %c0_7 = arith.constant 0 : index
    %c0_8 = arith.constant 0 : index
    %9 = vector.load %arg2[%8, %c0_7, %c0_8] : memref<8x16x384xbf16, #tpu.memory_space<vmem>>, vector<1x16x384xbf16>
    %10 = vector.shape_cast %9 : vector<1x16x384xbf16> to vector<16x384xbf16>
    %11 = arith.extf %10 : vector<16x384xbf16> to vector<16x384xf32>
    %12 = arith.truncf %7 : vector<16x128xf32> to vector<16x128xbf16>
    %cst = arith.constant dense<0.000000e+00> : vector<16x384xf32>
    %13 = tpu.matmul %12, %3, %cst {dimension_numbers = #tpu.dot_dimension_numbers<[1], [0], [0], [1], [0, 0, 1, 1], [], []>} : vector<16x128xbf16>, vector<128x384xbf16>, vector<16x384xf32> -> vector<16x384xf32>
    %14 = vector.extract_strided_slice %11 {offsets = [0, 0], sizes = [16, 128], strides = [1, 1]} : vector<16x384xf32> to vector<16x128xf32>
    %15 = vector.extract_strided_slice %13 {offsets = [0, 0], sizes = [16, 128], strides = [1, 1]} : vector<16x384xf32> to vector<16x128xf32>
    %16 = arith.addf %14, %15 : vector<16x128xf32>
    %17 = arith.negf %16 : vector<16x128xf32>
    %18 = math.exp %17 : vector<16x128xf32>
    %cst_9 = arith.constant 1.000000e+00 : f32
    %19 = vector.broadcast %cst_9 : f32 to vector<16x128xf32>
    %20 = arith.addf %19, %18 : vector<16x128xf32>
    %21 = arith.divf %19, %20 : vector<16x128xf32>
    %22 = vector.extract_strided_slice %11 {offsets = [0, 128], sizes = [16, 128], strides = [1, 1]} : vector<16x384xf32> to vector<16x128xf32>
    %23 = vector.extract_strided_slice %13 {offsets = [0, 128], sizes = [16, 128], strides = [1, 1]} : vector<16x384xf32> to vector<16x128xf32>
    %24 = arith.addf %22, %23 : vector<16x128xf32>
    %25 = arith.negf %24 : vector<16x128xf32>
    %26 = math.exp %25 : vector<16x128xf32>
    %cst_10 = arith.constant 1.000000e+00 : f32
    %27 = vector.broadcast %cst_10 : f32 to vector<16x128xf32>
    %28 = arith.addf %27, %26 : vector<16x128xf32>
    %29 = arith.divf %27, %28 : vector<16x128xf32>
    %30 = vector.extract_strided_slice %11 {offsets = [0, 256], sizes = [16, 128], strides = [1, 1]} : vector<16x384xf32> to vector<16x128xf32>
    %31 = vector.extract_strided_slice %13 {offsets = [0, 256], sizes = [16, 128], strides = [1, 1]} : vector<16x384xf32> to vector<16x128xf32>
    %32 = arith.addf %31, %6 : vector<16x128xf32>
    %33 = arith.mulf %21, %32 : vector<16x128xf32>
    %34 = arith.addf %30, %33 : vector<16x128xf32>
    %35 = math.tanh %34 : vector<16x128xf32>
    %cst_11 = arith.constant 1.000000e+00 : f32
    %36 = vector.broadcast %cst_11 : f32 to vector<16x128xf32>
    %37 = arith.subf %36, %29 : vector<16x128xf32>
    %38 = arith.mulf %37, %35 : vector<16x128xf32>
    %39 = arith.mulf %29, %7 : vector<16x128xf32>
    %40 = arith.addf %38, %39 : vector<16x128xf32>
    %41 = arith.truncf %40 : vector<16x128xf32> to vector<16x128xbf16>
    %42 = arith.index_cast %c0_i32_6 : i32 to index
    %c0_12 = arith.constant 0 : index
    %c0_13 = arith.constant 0 : index
    %43 = vector.load %arg5[%42, %c0_12, %c0_13] : memref<8x16x128xbf16, #tpu.memory_space<vmem>>, vector<1x16x128xbf16>
    %44 = vector.shape_cast %43 : vector<1x16x128xbf16> to vector<16x128xbf16>
    %45 = vector.shape_cast %41 : vector<16x128xbf16> to vector<1x16x128xbf16>
    tpu.vector_store %arg5[%42, %c0_12, %c0_13], %45 {strides = array<i32>} : memref<8x16x128xbf16, #tpu.memory_space<vmem>>, vector<1x16x128xbf16>,
    %c1_i32 = arith.constant 1 : i32
    %46 = arith.index_cast %c1_i32 : i32 to index
    %c0_14 = arith.constant 0 : index
    %c0_15 = arith.constant 0 : index
    %47 = vector.load %arg2[%46, %c0_14, %c0_15] : memref<8x16x384xbf16, #tpu.memory_space<vmem>>, vector<1x16x384xbf16>
    %48 = vector.shape_cast %47 : vector<1x16x384xbf16> to vector<16x384xbf16>
    %49 = arith.extf %48 : vector<16x384xbf16> to vector<16x384xf32>
    %50 = arith.truncf %40 : vector<16x128xf32> to vector<16x128xbf16>
    %cst_16 = arith.constant dense<0.000000e+00> : vector<16x384xf32>
    %51 = tpu.matmul %50, %3, %cst_16 {dimension_numbers = #tpu.dot_dimension_numbers<[1], [0], [0], [1], [0, 0, 1, 1], [], []>} : vector<16x128xbf16>, vector<128x384xbf16>, vector<16x384xf32> -> vector<16x384xf32>
    %52 = vector.extract_strided_slice %49 {offsets = [0, 0], sizes = [16, 128], strides = [1, 1]} : vector<16x384xf32> to vector<16x128xf32>
    %53 = vector.extract_strided_slice %51 {offsets = [0, 0], sizes = [16, 128], strides = [1, 1]} : vector<16x384xf32> to vector<16x128xf32>
    %54 = arith.addf %52, %53 : vector<16x128xf32>
    %55 = arith.negf %54 : vector<16x128xf32>
    %56 = math.exp %55 : vector<16x128xf32>
    %cst_17 = arith.constant 1.000000e+00 : f32
    %57 = vector.broadcast %cst_17 : f32 to vector<16x128xf32>
    %58 = arith.addf %57, %56 : vector<16x128xf32>
    %59 = arith.divf %57, %58 : vector<16x128xf32>
    %60 = vector.extract_strided_slice %49 {offsets = [0, 128], sizes = [16, 128], strides = [1, 1]} : vector<16x384xf32> to vector<16x128xf32>
    %61 = vector.extract_strided_slice %51 {offsets = [0, 128], sizes = [16, 128], strides = [1, 1]} : vector<16x384xf32> to vector<16x128xf32>
    %62 = arith.addf %60, %61 : vector<16x128xf32>
    %63 = arith.negf %62 : vector<16x128xf32>
    %64 = math.exp %63 : vector<16x128xf32>
    %cst_18 = arith.constant 1.000000e+00 : f32
    %65 = vector.broadcast %cst_18 : f32 to vector<16x128xf32>
    %66 = arith.addf %65, %64 : vector<16x128xf32>
    %67 = arith.divf %65, %66 : vector<16x128xf32>
    %68 = vector.extract_strided_slice %49 {offsets = [0, 256], sizes = [16, 128], strides = [1, 1]} : vector<16x384xf32> to vector<16x128xf32>
    %69 = vector.extract_strided_slice %51 {offsets = [0, 256], sizes = [16, 128], strides = [1, 1]} : vector<16x384xf32> to vector<16x128xf32>
    %70 = arith.addf %69, %6 : vector<16x128xf32>
    %71 = arith.mulf %59, %70 : vector<16x128xf32>
    %72 = arith.addf %68, %71 : vector<16x128xf32>
    %73 = math.tanh %72 : vector<16x128xf32>
    %cst_19 = arith.constant 1.000000e+00 : f32
    %74 = vector.broadcast %cst_19 : f32 to vector<16x128xf32>
    %75 = arith.subf %74, %67 : vector<16x128xf32>
    %76 = arith.mulf %75, %73 : vector<16x128xf32>
    %77 = arith.mulf %67, %40 : vector<16x128xf32>
    %78 = arith.addf %76, %77 : vector<16x128xf32>
    %79 = arith.truncf %78 : vector<16x128xf32> to vector<16x128xbf16>
    %80 = arith.index_cast %c1_i32 : i32 to index
    %c0_20 = arith.constant 0 : index
    %c0_21 = arith.constant 0 : index
    %81 = vector.load %arg5[%80, %c0_20, %c0_21] : memref<8x16x128xbf16, #tpu.memory_space<vmem>>, vector<1x16x128xbf16>
    %82 = vector.shape_cast %81 : vector<1x16x128xbf16> to vector<16x128xbf16>
    %83 = vector.shape_cast %79 : vector<16x128xbf16> to vector<1x16x128xbf16>
    tpu.vector_store %arg5[%80, %c0_20, %c0_21], %83 {strides = array<i32>} : memref<8x16x128xbf16, #tpu.memory_space<vmem>>, vector<1x16x128xbf16>,
    %c2_i32 = arith.constant 2 : i32
    %84 = arith.index_cast %c2_i32 : i32 to index
    %c0_22 = arith.constant 0 : index
    %c0_23 = arith.constant 0 : index
    %85 = vector.load %arg2[%84, %c0_22, %c0_23] : memref<8x16x384xbf16, #tpu.memory_space<vmem>>, vector<1x16x384xbf16>
    %86 = vector.shape_cast %85 : vector<1x16x384xbf16> to vector<16x384xbf16>
    %87 = arith.extf %86 : vector<16x384xbf16> to vector<16x384xf32>
    %88 = arith.truncf %78 : vector<16x128xf32> to vector<16x128xbf16>
    %cst_24 = arith.constant dense<0.000000e+00> : vector<16x384xf32>
    %89 = tpu.matmul %88, %3, %cst_24 {dimension_numbers = #tpu.dot_dimension_numbers<[1], [0], [0], [1], [0, 0, 1, 1], [], []>} : vector<16x128xbf16>, vector<128x384xbf16>, vector<16x384xf32> -> vector<16x384xf32>
    %90 = vector.extract_strided_slice %87 {offsets = [0, 0], sizes = [16, 128], strides = [1, 1]} : vector<16x384xf32> to vector<16x128xf32>
    %91 = vector.extract_strided_slice %89 {offsets = [0, 0], sizes = [16, 128], strides = [1, 1]} : vector<16x384xf32> to vector<16x128xf32>
    %92 = arith.addf %90, %91 : vector<16x128xf32>
    %93 = arith.negf %92 : vector<16x128xf32>
    %94 = math.exp %93 : vector<16x128xf32>
    %cst_25 = arith.constant 1.000000e+00 : f32
    %95 = vector.broadcast %cst_25 : f32 to vector<16x128xf32>
    %96 = arith.addf %95, %94 : vector<16x128xf32>
    %97 = arith.divf %95, %96 : vector<16x128xf32>
    %98 = vector.extract_strided_slice %87 {offsets = [0, 128], sizes = [16, 128], strides = [1, 1]} : vector<16x384xf32> to vector<16x128xf32>
    %99 = vector.extract_strided_slice %89 {offsets = [0, 128], sizes = [16, 128], strides = [1, 1]} : vector<16x384xf32> to vector<16x128xf32>
    %100 = arith.addf %98, %99 : vector<16x128xf32>
    %101 = arith.negf %100 : vector<16x128xf32>
    %102 = math.exp %101 : vector<16x128xf32>
    %cst_26 = arith.constant 1.000000e+00 : f32
    %103 = vector.broadcast %cst_26 : f32 to vector<16x128xf32>
    %104 = arith.addf %103, %102 : vector<16x128xf32>
    %105 = arith.divf %103, %104 : vector<16x128xf32>
    %106 = vector.extract_strided_slice %87 {offsets = [0, 256], sizes = [16, 128], strides = [1, 1]} : vector<16x384xf32> to vector<16x128xf32>
    %107 = vector.extract_strided_slice %89 {offsets = [0, 256], sizes = [16, 128], strides = [1, 1]} : vector<16x384xf32> to vector<16x128xf32>
    %108 = arith.addf %107, %6 : vector<16x128xf32>
    %109 = arith.mulf %97, %108 : vector<16x128xf32>
    %110 = arith.addf %106, %109 : vector<16x128xf32>
    %111 = math.tanh %110 : vector<16x128xf32>
    %cst_27 = arith.constant 1.000000e+00 : f32
    %112 = vector.broadcast %cst_27 : f32 to vector<16x128xf32>
    %113 = arith.subf %112, %105 : vector<16x128xf32>
    %114 = arith.mulf %113, %111 : vector<16x128xf32>
    %115 = arith.mulf %105, %78 : vector<16x128xf32>
    %116 = arith.addf %114, %115 : vector<16x128xf32>
    %117 = arith.truncf %116 : vector<16x128xf32> to vector<16x128xbf16>
    %118 = arith.index_cast %c2_i32 : i32 to index
    %c0_28 = arith.constant 0 : index
    %c0_29 = arith.constant 0 : index
    %119 = vector.load %arg5[%118, %c0_28, %c0_29] : memref<8x16x128xbf16, #tpu.memory_space<vmem>>, vector<1x16x128xbf16>
    %120 = vector.shape_cast %119 : vector<1x16x128xbf16> to vector<16x128xbf16>
    %121 = vector.shape_cast %117 : vector<16x128xbf16> to vector<1x16x128xbf16>
    tpu.vector_store %arg5[%118, %c0_28, %c0_29], %121 {strides = array<i32>} : memref<8x16x128xbf16, #tpu.memory_space<vmem>>, vector<1x16x128xbf16>,
    %c3_i32 = arith.constant 3 : i32
    %122 = arith.index_cast %c3_i32 : i32 to index
    %c0_30 = arith.constant 0 : index
    %c0_31 = arith.constant 0 : index
    %123 = vector.load %arg2[%122, %c0_30, %c0_31] : memref<8x16x384xbf16, #tpu.memory_space<vmem>>, vector<1x16x384xbf16>
    %124 = vector.shape_cast %123 : vector<1x16x384xbf16> to vector<16x384xbf16>
    %125 = arith.extf %124 : vector<16x384xbf16> to vector<16x384xf32>
    %126 = arith.truncf %116 : vector<16x128xf32> to vector<16x128xbf16>
    %cst_32 = arith.constant dense<0.000000e+00> : vector<16x384xf32>
    %127 = tpu.matmul %126, %3, %cst_32 {dimension_numbers = #tpu.dot_dimension_numbers<[1], [0], [0], [1], [0, 0, 1, 1], [], []>} : vector<16x128xbf16>, vector<128x384xbf16>, vector<16x384xf32> -> vector<16x384xf32>
    %128 = vector.extract_strided_slice %125 {offsets = [0, 0], sizes = [16, 128], strides = [1, 1]} : vector<16x384xf32> to vector<16x128xf32>
    %129 = vector.extract_strided_slice %127 {offsets = [0, 0], sizes = [16, 128], strides = [1, 1]} : vector<16x384xf32> to vector<16x128xf32>
    %130 = arith.addf %128, %129 : vector<16x128xf32>
    %131 = arith.negf %130 : vector<16x128xf32>
    %132 = math.exp %131 : vector<16x128xf32>
    %cst_33 = arith.constant 1.000000e+00 : f32
    %133 = vector.broadcast %cst_33 : f32 to vector<16x128xf32>
    %134 = arith.addf %133, %132 : vector<16x128xf32>
    %135 = arith.divf %133, %134 : vector<16x128xf32>
    %136 = vector.extract_strided_slice %125 {offsets = [0, 128], sizes = [16, 128], strides = [1, 1]} : vector<16x384xf32> to vector<16x128xf32>
    %137 = vector.extract_strided_slice %127 {offsets = [0, 128], sizes = [16, 128], strides = [1, 1]} : vector<16x384xf32> to vector<16x128xf32>
    %138 = arith.addf %136, %137 : vector<16x128xf32>
    %139 = arith.negf %138 : vector<16x128xf32>
    %140 = math.exp %139 : vector<16x128xf32>
    %cst_34 = arith.constant 1.000000e+00 : f32
    %141 = vector.broadcast %cst_34 : f32 to vector<16x128xf32>
    %142 = arith.addf %141, %140 : vector<16x128xf32>
    %143 = arith.divf %141, %142 : vector<16x128xf32>
    %144 = vector.extract_strided_slice %125 {offsets = [0, 256], sizes = [16, 128], strides = [1, 1]} : vector<16x384xf32> to vector<16x128xf32>
    %145 = vector.extract_strided_slice %127 {offsets = [0, 256], sizes = [16, 128], strides = [1, 1]} : vector<16x384xf32> to vector<16x128xf32>
    %146 = arith.addf %145, %6 : vector<16x128xf32>
    %147 = arith.mulf %135, %146 : vector<16x128xf32>
    %148 = arith.addf %144, %147 : vector<16x128xf32>
    %149 = math.tanh %148 : vector<16x128xf32>
    %cst_35 = arith.constant 1.000000e+00 : f32
    %150 = vector.broadcast %cst_35 : f32 to vector<16x128xf32>
    %151 = arith.subf %150, %143 : vector<16x128xf32>
    %152 = arith.mulf %151, %149 : vector<16x128xf32>
    %153 = arith.mulf %143, %116 : vector<16x128xf32>
    %154 = arith.addf %152, %153 : vector<16x128xf32>
    %155 = arith.truncf %154 : vector<16x128xf32> to vector<16x128xbf16>
    %156 = arith.index_cast %c3_i32 : i32 to index
    %c0_36 = arith.constant 0 : index
    %c0_37 = arith.constant 0 : index
    %157 = vector.load %arg5[%156, %c0_36, %c0_37] : memref<8x16x128xbf16, #tpu.memory_space<vmem>>, vector<1x16x128xbf16>
    %158 = vector.shape_cast %157 : vector<1x16x128xbf16> to vector<16x128xbf16>
    %159 = vector.shape_cast %155 : vector<16x128xbf16> to vector<1x16x128xbf16>
    tpu.vector_store %arg5[%156, %c0_36, %c0_37], %159 {strides = array<i32>} : memref<8x16x128xbf16, #tpu.memory_space<vmem>>, vector<1x16x128xbf16>,
    %c4_i32 = arith.constant 4 : i32
    %160 = arith.index_cast %c4_i32 : i32 to index
    %c0_38 = arith.constant 0 : index
    %c0_39 = arith.constant 0 : index
    %161 = vector.load %arg2[%160, %c0_38, %c0_39] : memref<8x16x384xbf16, #tpu.memory_space<vmem>>, vector<1x16x384xbf16>
    %162 = vector.shape_cast %161 : vector<1x16x384xbf16> to vector<16x384xbf16>
    %163 = arith.extf %162 : vector<16x384xbf16> to vector<16x384xf32>
    %164 = arith.truncf %154 : vector<16x128xf32> to vector<16x128xbf16>
    %cst_40 = arith.constant dense<0.000000e+00> : vector<16x384xf32>
    %165 = tpu.matmul %164, %3, %cst_40 {dimension_numbers = #tpu.dot_dimension_numbers<[1], [0], [0], [1], [0, 0, 1, 1], [], []>} : vector<16x128xbf16>, vector<128x384xbf16>, vector<16x384xf32> -> vector<16x384xf32>
    %166 = vector.extract_strided_slice %163 {offsets = [0, 0], sizes = [16, 128], strides = [1, 1]} : vector<16x384xf32> to vector<16x128xf32>
    %167 = vector.extract_strided_slice %165 {offsets = [0, 0], sizes = [16, 128], strides = [1, 1]} : vector<16x384xf32> to vector<16x128xf32>
    %168 = arith.addf %166, %167 : vector<16x128xf32>
    %169 = arith.negf %168 : vector<16x128xf32>
    %170 = math.exp %169 : vector<16x128xf32>
    %cst_41 = arith.constant 1.000000e+00 : f32
    %171 = vector.broadcast %cst_41 : f32 to vector<16x128xf32>
    %172 = arith.addf %171, %170 : vector<16x128xf32>
    %173 = arith.divf %171, %172 : vector<16x128xf32>
    %174 = vector.extract_strided_slice %163 {offsets = [0, 128], sizes = [16, 128], strides = [1, 1]} : vector<16x384xf32> to vector<16x128xf32>
    %175 = vector.extract_strided_slice %165 {offsets = [0, 128], sizes = [16, 128], strides = [1, 1]} : vector<16x384xf32> to vector<16x128xf32>
    %176 = arith.addf %174, %175 : vector<16x128xf32>
    %177 = arith.negf %176 : vector<16x128xf32>
    %178 = math.exp %177 : vector<16x128xf32>
    %cst_42 = arith.constant 1.000000e+00 : f32
    %179 = vector.broadcast %cst_42 : f32 to vector<16x128xf32>
    %180 = arith.addf %179, %178 : vector<16x128xf32>
    %181 = arith.divf %179, %180 : vector<16x128xf32>
    %182 = vector.extract_strided_slice %163 {offsets = [0, 256], sizes = [16, 128], strides = [1, 1]} : vector<16x384xf32> to vector<16x128xf32>
    %183 = vector.extract_strided_slice %165 {offsets = [0, 256], sizes = [16, 128], strides = [1, 1]} : vector<16x384xf32> to vector<16x128xf32>
    %184 = arith.addf %183, %6 : vector<16x128xf32>
    %185 = arith.mulf %173, %184 : vector<16x128xf32>
    %186 = arith.addf %182, %185 : vector<16x128xf32>
    %187 = math.tanh %186 : vector<16x128xf32>
    %cst_43 = arith.constant 1.000000e+00 : f32
    %188 = vector.broadcast %cst_43 : f32 to vector<16x128xf32>
    %189 = arith.subf %188, %181 : vector<16x128xf32>
    %190 = arith.mulf %189, %187 : vector<16x128xf32>
    %191 = arith.mulf %181, %154 : vector<16x128xf32>
    %192 = arith.addf %190, %191 : vector<16x128xf32>
    %193 = arith.truncf %192 : vector<16x128xf32> to vector<16x128xbf16>
    %194 = arith.index_cast %c4_i32 : i32 to index
    %c0_44 = arith.constant 0 : index
    %c0_45 = arith.constant 0 : index
    %195 = vector.load %arg5[%194, %c0_44, %c0_45] : memref<8x16x128xbf16, #tpu.memory_space<vmem>>, vector<1x16x128xbf16>
    %196 = vector.shape_cast %195 : vector<1x16x128xbf16> to vector<16x128xbf16>
    %197 = vector.shape_cast %193 : vector<16x128xbf16> to vector<1x16x128xbf16>
    tpu.vector_store %arg5[%194, %c0_44, %c0_45], %197 {strides = array<i32>} : memref<8x16x128xbf16, #tpu.memory_space<vmem>>, vector<1x16x128xbf16>,
    %c5_i32 = arith.constant 5 : i32
    %198 = arith.index_cast %c5_i32 : i32 to index
    %c0_46 = arith.constant 0 : index
    %c0_47 = arith.constant 0 : index
    %199 = vector.load %arg2[%198, %c0_46, %c0_47] : memref<8x16x384xbf16, #tpu.memory_space<vmem>>, vector<1x16x384xbf16>
    %200 = vector.shape_cast %199 : vector<1x16x384xbf16> to vector<16x384xbf16>
    %201 = arith.extf %200 : vector<16x384xbf16> to vector<16x384xf32>
    %202 = arith.truncf %192 : vector<16x128xf32> to vector<16x128xbf16>
    %cst_48 = arith.constant dense<0.000000e+00> : vector<16x384xf32>
    %203 = tpu.matmul %202, %3, %cst_48 {dimension_numbers = #tpu.dot_dimension_numbers<[1], [0], [0], [1], [0, 0, 1, 1], [], []>} : vector<16x128xbf16>, vector<128x384xbf16>, vector<16x384xf32> -> vector<16x384xf32>
    %204 = vector.extract_strided_slice %201 {offsets = [0, 0], sizes = [16, 128], strides = [1, 1]} : vector<16x384xf32> to vector<16x128xf32>
    %205 = vector.extract_strided_slice %203 {offsets = [0, 0], sizes = [16, 128], strides = [1, 1]} : vector<16x384xf32> to vector<16x128xf32>
    %206 = arith.addf %204, %205 : vector<16x128xf32>
    %207 = arith.negf %206 : vector<16x128xf32>
    %208 = math.exp %207 : vector<16x128xf32>
    %cst_49 = arith.constant 1.000000e+00 : f32
    %209 = vector.broadcast %cst_49 : f32 to vector<16x128xf32>
    %210 = arith.addf %209, %208 : vector<16x128xf32>
    %211 = arith.divf %209, %210 : vector<16x128xf32>
    %212 = vector.extract_strided_slice %201 {offsets = [0, 128], sizes = [16, 128], strides = [1, 1]} : vector<16x384xf32> to vector<16x128xf32>
    %213 = vector.extract_strided_slice %203 {offsets = [0, 128], sizes = [16, 128], strides = [1, 1]} : vector<16x384xf32> to vector<16x128xf32>
    %214 = arith.addf %212, %213 : vector<16x128xf32>
    %215 = arith.negf %214 : vector<16x128xf32>
    %216 = math.exp %215 : vector<16x128xf32>
    %cst_50 = arith.constant 1.000000e+00 : f32
    %217 = vector.broadcast %cst_50 : f32 to vector<16x128xf32>
    %218 = arith.addf %217, %216 : vector<16x128xf32>
    %219 = arith.divf %217, %218 : vector<16x128xf32>
    %220 = vector.extract_strided_slice %201 {offsets = [0, 256], sizes = [16, 128], strides = [1, 1]} : vector<16x384xf32> to vector<16x128xf32>
    %221 = vector.extract_strided_slice %203 {offsets = [0, 256], sizes = [16, 128], strides = [1, 1]} : vector<16x384xf32> to vector<16x128xf32>
    %222 = arith.addf %221, %6 : vector<16x128xf32>
    %223 = arith.mulf %211, %222 : vector<16x128xf32>
    %224 = arith.addf %220, %223 : vector<16x128xf32>
    %225 = math.tanh %224 : vector<16x128xf32>
    %cst_51 = arith.constant 1.000000e+00 : f32
    %226 = vector.broadcast %cst_51 : f32 to vector<16x128xf32>
    %227 = arith.subf %226, %219 : vector<16x128xf32>
    %228 = arith.mulf %227, %225 : vector<16x128xf32>
    %229 = arith.mulf %219, %192 : vector<16x128xf32>
    %230 = arith.addf %228, %229 : vector<16x128xf32>
    %231 = arith.truncf %230 : vector<16x128xf32> to vector<16x128xbf16>
    %232 = arith.index_cast %c5_i32 : i32 to index
    %c0_52 = arith.constant 0 : index
    %c0_53 = arith.constant 0 : index
    %233 = vector.load %arg5[%232, %c0_52, %c0_53] : memref<8x16x128xbf16, #tpu.memory_space<vmem>>, vector<1x16x128xbf16>
    %234 = vector.shape_cast %233 : vector<1x16x128xbf16> to vector<16x128xbf16>
    %235 = vector.shape_cast %231 : vector<16x128xbf16> to vector<1x16x128xbf16>
    tpu.vector_store %arg5[%232, %c0_52, %c0_53], %235 {strides = array<i32>} : memref<8x16x128xbf16, #tpu.memory_space<vmem>>, vector<1x16x128xbf16>,
    %c6_i32 = arith.constant 6 : i32
    %236 = arith.index_cast %c6_i32 : i32 to index
    %c0_54 = arith.constant 0 : index
    %c0_55 = arith.constant 0 : index
    %237 = vector.load %arg2[%236, %c0_54, %c0_55] : memref<8x16x384xbf16, #tpu.memory_space<vmem>>, vector<1x16x384xbf16>
    %238 = vector.shape_cast %237 : vector<1x16x384xbf16> to vector<16x384xbf16>
    %239 = arith.extf %238 : vector<16x384xbf16> to vector<16x384xf32>
    %240 = arith.truncf %230 : vector<16x128xf32> to vector<16x128xbf16>
    %cst_56 = arith.constant dense<0.000000e+00> : vector<16x384xf32>
    %241 = tpu.matmul %240, %3, %cst_56 {dimension_numbers = #tpu.dot_dimension_numbers<[1], [0], [0], [1], [0, 0, 1, 1], [], []>} : vector<16x128xbf16>, vector<128x384xbf16>, vector<16x384xf32> -> vector<16x384xf32>
    %242 = vector.extract_strided_slice %239 {offsets = [0, 0], sizes = [16, 128], strides = [1, 1]} : vector<16x384xf32> to vector<16x128xf32>
    %243 = vector.extract_strided_slice %241 {offsets = [0, 0], sizes = [16, 128], strides = [1, 1]} : vector<16x384xf32> to vector<16x128xf32>
    %244 = arith.addf %242, %243 : vector<16x128xf32>
    %245 = arith.negf %244 : vector<16x128xf32>
    %246 = math.exp %245 : vector<16x128xf32>
    %cst_57 = arith.constant 1.000000e+00 : f32
    %247 = vector.broadcast %cst_57 : f32 to vector<16x128xf32>
    %248 = arith.addf %247, %246 : vector<16x128xf32>
    %249 = arith.divf %247, %248 : vector<16x128xf32>
    %250 = vector.extract_strided_slice %239 {offsets = [0, 128], sizes = [16, 128], strides = [1, 1]} : vector<16x384xf32> to vector<16x128xf32>
    %251 = vector.extract_strided_slice %241 {offsets = [0, 128], sizes = [16, 128], strides = [1, 1]} : vector<16x384xf32> to vector<16x128xf32>
    %252 = arith.addf %250, %251 : vector<16x128xf32>
    %253 = arith.negf %252 : vector<16x128xf32>
    %254 = math.exp %253 : vector<16x128xf32>
    %cst_58 = arith.constant 1.000000e+00 : f32
    %255 = vector.broadcast %cst_58 : f32 to vector<16x128xf32>
    %256 = arith.addf %255, %254 : vector<16x128xf32>
    %257 = arith.divf %255, %256 : vector<16x128xf32>
    %258 = vector.extract_strided_slice %239 {offsets = [0, 256], sizes = [16, 128], strides = [1, 1]} : vector<16x384xf32> to vector<16x128xf32>
    %259 = vector.extract_strided_slice %241 {offsets = [0, 256], sizes = [16, 128], strides = [1, 1]} : vector<16x384xf32> to vector<16x128xf32>
    %260 = arith.addf %259, %6 : vector<16x128xf32>
    %261 = arith.mulf %249, %260 : vector<16x128xf32>
    %262 = arith.addf %258, %261 : vector<16x128xf32>
    %263 = math.tanh %262 : vector<16x128xf32>
    %cst_59 = arith.constant 1.000000e+00 : f32
    %264 = vector.broadcast %cst_59 : f32 to vector<16x128xf32>
    %265 = arith.subf %264, %257 : vector<16x128xf32>
    %266 = arith.mulf %265, %263 : vector<16x128xf32>
    %267 = arith.mulf %257, %230 : vector<16x128xf32>
    %268 = arith.addf %266, %267 : vector<16x128xf32>
    %269 = arith.truncf %268 : vector<16x128xf32> to vector<16x128xbf16>
    %270 = arith.index_cast %c6_i32 : i32 to index
    %c0_60 = arith.constant 0 : index
    %c0_61 = arith.constant 0 : index
    %271 = vector.load %arg5[%270, %c0_60, %c0_61] : memref<8x16x128xbf16, #tpu.memory_space<vmem>>, vector<1x16x128xbf16>
    %272 = vector.shape_cast %271 : vector<1x16x128xbf16> to vector<16x128xbf16>
    %273 = vector.shape_cast %269 : vector<16x128xbf16> to vector<1x16x128xbf16>
    tpu.vector_store %arg5[%270, %c0_60, %c0_61], %273 {strides = array<i32>} : memref<8x16x128xbf16, #tpu.memory_space<vmem>>, vector<1x16x128xbf16>,
    %c7_i32 = arith.constant 7 : i32
    %274 = arith.index_cast %c7_i32 : i32 to index
    %c0_62 = arith.constant 0 : index
    %c0_63 = arith.constant 0 : index
    %275 = vector.load %arg2[%274, %c0_62, %c0_63] : memref<8x16x384xbf16, #tpu.memory_space<vmem>>, vector<1x16x384xbf16>
    %276 = vector.shape_cast %275 : vector<1x16x384xbf16> to vector<16x384xbf16>
    %277 = arith.extf %276 : vector<16x384xbf16> to vector<16x384xf32>
    %278 = arith.truncf %268 : vector<16x128xf32> to vector<16x128xbf16>
    %cst_64 = arith.constant dense<0.000000e+00> : vector<16x384xf32>
    %279 = tpu.matmul %278, %3, %cst_64 {dimension_numbers = #tpu.dot_dimension_numbers<[1], [0], [0], [1], [0, 0, 1, 1], [], []>} : vector<16x128xbf16>, vector<128x384xbf16>, vector<16x384xf32> -> vector<16x384xf32>
    %280 = vector.extract_strided_slice %277 {offsets = [0, 0], sizes = [16, 128], strides = [1, 1]} : vector<16x384xf32> to vector<16x128xf32>
    %281 = vector.extract_strided_slice %279 {offsets = [0, 0], sizes = [16, 128], strides = [1, 1]} : vector<16x384xf32> to vector<16x128xf32>
    %282 = arith.addf %280, %281 : vector<16x128xf32>
    %283 = arith.negf %282 : vector<16x128xf32>
    %284 = math.exp %283 : vector<16x128xf32>
    %cst_65 = arith.constant 1.000000e+00 : f32
    %285 = vector.broadcast %cst_65 : f32 to vector<16x128xf32>
    %286 = arith.addf %285, %284 : vector<16x128xf32>
    %287 = arith.divf %285, %286 : vector<16x128xf32>
    %288 = vector.extract_strided_slice %277 {offsets = [0, 128], sizes = [16, 128], strides = [1, 1]} : vector<16x384xf32> to vector<16x128xf32>
    %289 = vector.extract_strided_slice %279 {offsets = [0, 128], sizes = [16, 128], strides = [1, 1]} : vector<16x384xf32> to vector<16x128xf32>
    %290 = arith.addf %288, %289 : vector<16x128xf32>
    %291 = arith.negf %290 : vector<16x128xf32>
    %292 = math.exp %291 : vector<16x128xf32>
    %cst_66 = arith.constant 1.000000e+00 : f32
    %293 = vector.broadcast %cst_66 : f32 to vector<16x128xf32>
    %294 = arith.addf %293, %292 : vector<16x128xf32>
    %295 = arith.divf %293, %294 : vector<16x128xf32>
    %296 = vector.extract_strided_slice %277 {offsets = [0, 256], sizes = [16, 128], strides = [1, 1]} : vector<16x384xf32> to vector<16x128xf32>
    %297 = vector.extract_strided_slice %279 {offsets = [0, 256], sizes = [16, 128], strides = [1, 1]} : vector<16x384xf32> to vector<16x128xf32>
    %298 = arith.addf %297, %6 : vector<16x128xf32>
    %299 = arith.mulf %287, %298 : vector<16x128xf32>
    %300 = arith.addf %296, %299 : vector<16x128xf32>
    %301 = math.tanh %300 : vector<16x128xf32>
    %cst_67 = arith.constant 1.000000e+00 : f32
    %302 = vector.broadcast %cst_67 : f32 to vector<16x128xf32>
    %303 = arith.subf %302, %295 : vector<16x128xf32>
    %304 = arith.mulf %303, %301 : vector<16x128xf32>
    %305 = arith.mulf %295, %268 : vector<16x128xf32>
    %306 = arith.addf %304, %305 : vector<16x128xf32>
    %307 = arith.truncf %306 : vector<16x128xf32> to vector<16x128xbf16>
    %308 = arith.index_cast %c7_i32 : i32 to index
    %c0_68 = arith.constant 0 : index
    %c0_69 = arith.constant 0 : index
    %309 = vector.load %arg5[%308, %c0_68, %c0_69] : memref<8x16x128xbf16, #tpu.memory_space<vmem>>, vector<1x16x128xbf16>
    %310 = vector.shape_cast %309 : vector<1x16x128xbf16> to vector<16x128xbf16>
    %311 = vector.shape_cast %307 : vector<16x128xbf16> to vector<1x16x128xbf16>
    tpu.vector_store %arg5[%308, %c0_68, %c0_69], %311 {strides = array<i32>} : memref<8x16x128xbf16, #tpu.memory_space<vmem>>, vector<1x16x128xbf16>,
    %c8_i32 = arith.constant 8 : i32
    %c0_70 = arith.constant 0 : index
    %c0_71 = arith.constant 0 : index
    %312 = vector.load %arg6[%c0_70, %c0_71] : memref<16x128xf32, #tpu.memory_space<vmem>>, vector<16x128xf32>
    tpu.vector_store %arg6[%c0_70, %c0_71], %306 {strides = array<i32>} : memref<16x128xf32, #tpu.memory_space<vmem>>, vector<16x128xf32>,
    return
  }
  func.func @transform_0(%arg0: i32, %arg1: i32) -> (i32, i32, i32) {
    %c0_i32 = arith.constant 0 : i32
    %c0_i32_0 = arith.constant 0 : i32
    return %arg1, %arg0, %c0_i32 : i32, i32, i32
  }
  func.func @transform_1(%arg0: i32, %arg1: i32) -> (i32, i32) {
    %c0_i32 = arith.constant 0 : i32
    %c0_i32_0 = arith.constant 0 : i32
    %c0_i32_1 = arith.constant 0 : i32
    return %c0_i32, %c0_i32_0 : i32, i32
  }
  func.func @transform_2(%arg0: i32, %arg1: i32) -> (i32, i32) {
    %c0_i32 = arith.constant 0 : i32
    %c0_i32_0 = arith.constant 0 : i32
    %c0_i32_1 = arith.constant 0 : i32
    return %c0_i32, %c0_i32_0 : i32, i32
  }
  func.func @transform_3(%arg0: i32, %arg1: i32) -> (i32, i32, i32) {
    %c0_i32 = arith.constant 0 : i32
    %c0_i32_0 = arith.constant 0 : i32
    return %arg1, %arg0, %c0_i32 : i32, i32, i32
  }
  func.func @transform_4(%arg0: i32, %arg1: i32) -> (i32, i32) {
    %c0_i32 = arith.constant 0 : i32
    %c0_i32_0 = arith.constant 0 : i32
    return %arg0, %c0_i32 : i32, i32
  }
}

</mosaic_0001>

<bundles_post_ra>
// kernel: tpu_custom_call.1
= control target key start
LH: loop header
LB: loop body
LE: loop exit
PB: predicated region body
PF: predicated region fallthrough
CT: control target
= control target key end

     0   :  { %10 = vsyncpa [#allocation3], 0  ;;  %s2692_s0 = inlined_call_operand.hbm [shape: bf16[8,16,384], index: 0, kind: input, shape index: {}]   ;;  %s2693_s1 = inlined_call_operand.hbm [shape: bf16[128,384], index: 1, kind: input, shape index: {}]   ;;  %s2694_s2 = inlined_call_operand.vmem [shape: f32[1,128], index: 2, kind: input, shape index: {}]   ;;  %s2695_s3 = inlined_call_operand.hbm [shape: bf16[8,16,128], index: 3, kind: output, shape index: {0}]   ;;  %s2696_s4 = inlined_call_operand.hbm [shape: f32[16,128], index: 4, kind: output, shape index: {1}]  }
   0x1   :  { %11 = vsyncpa [#allocation6], 0 }
   0x2   :  { %12 = vsyncpa [#allocation4], 0 }
   0x3   :  { %13 = vsyncpa [#allocation9], 0  ;;  %s2144_s15 = smov [#allocation2]   ;;  %s2048_s19 = scalar_lea.hbm %s2692_s0, 3072 }
   0x4   :  { %s19_s16 = sshll.u32 %s2144_s15, 4  ;;  %p2049_p0 = scmp.ne.s32.totalorder %s2692_s0, %s2048_s19  ;;  %s20_s16 = int_to_ptr.vmem [resolvable:$true] %s19_s16 }
   0x5   :  { %p2052_p1 = scmp.lt.u32.totalorder %s2048_s19, %s2692_s0 }
   0x7   :  { %p2054_p2 = pnand %p2052_p1, %p2049_p0 }
   0x9   :  { %2057 = shalt.err (!%p2054_p2)
}
   0xa   :  { %s2058_s24 = scalar_lea.vmem %s20_s16, 3072  ;;  %p2063_p4 = scmp.lt.s32.totalorder %s20_s16, %s20_s16 }
   0xb   :  { %p2059_p3 = scmp.ne.s32.totalorder %s20_s16, %s2058_s24  ;;  %p2064_p5 = scmp.lt.s32.totalorder %s2058_s24, %s2058_s24 }
   0xd   :  { %p2065_p6 = por %p2064_p5, %p2063_p4 }
   0xf   :  { %p2066_p7 = pnand %p2065_p6, %p2059_p3 }
  0x11   :  { %2069 = shalt.err (!%p2066_p7)
}
  0x12   :  { %s2145_s25 = smov 192   ;;  %s2146_s26 = smov 12  }
  0x13   :  { %25 = dma.hbm_to_vmem [thread:$0]  %s2692_s0, 3072, %s20_s16, [#allocation3], %s2145_s25, %s2145_s25, %s2146_s26  }
  0x14   :  { %s2147_s29 = smov [#allocation5]   ;;  %s2070_s7 = scalar_lea.hbm %s2693_s1, 3072 }
  0x15   :  { %s31_s30 = sshll.u32 %s2147_s29, 4  ;;  %p2071_p8 = scmp.ne.s32.totalorder %s2693_s1, %s2070_s7  ;;  %s32_s30 = int_to_ptr.vmem [resolvable:$true] %s31_s30 }
  0x16   :  { %p2074_p9 = scmp.lt.u32.totalorder %s2070_s7, %s2693_s1 }
  0x18   :  { %p2076_p10 = pnand %p2074_p9, %p2071_p8 }
  0x1a   :  { %2079 = shalt.err (!%p2076_p10)
}
  0x1b   :  { %s2080_s12 = scalar_lea.vmem %s32_s30, 3072  ;;  %p2085_p12 = scmp.lt.s32.totalorder %s32_s30, %s32_s30 }
  0x1c   :  { %p2081_p11 = scmp.ne.s32.totalorder %s32_s30, %s2080_s12  ;;  %p2086_p13 = scmp.lt.s32.totalorder %s2080_s12, %s2080_s12 }
  0x1e   :  { %p2087_p0 = por %p2086_p13, %p2085_p12 }
  0x20   :  { %p2088_p1 = pnand %p2087_p0, %p2081_p11 }
  0x22   :  { %2091 = shalt.err (!%p2088_p1)
}
  0x23   :  { %37 = dma.hbm_to_vmem [thread:$0]  %s2693_s1, 3072, %s32_s30, [#allocation6], %s2145_s25, %s2145_s25, %s2146_s26  }
  0x24   :  { %2136 = dma.done.wait [#allocation3], 3072  }
  0x25   :  { %2137 = vsyncadd [#allocation3], 4294964224 }
  0x26   :  { %2138 = dma.done.wait [#allocation6], 3072  }
  0x27   :  { %2139 = vsyncadd [#allocation6], 4294964224  ;;  %v2148_v0 = vmov 0.0   ;;  %v2149_v1 = vmov 0   ;;  %vm2150_vm0 = vmmov 0   ;;  %v2151_v25 = vmov 0.0|0.0  }
  0x28   :  { %1658 = vmatprep.subr.bf16.mxu1 %v2148_v0  ;;  %265 = vmatprep.mubr.bf16.mxu0 %v2149_v1  ;;  %v2211_v2 = vld [vmem:[#allocation5 + $0x4] ss:$12 sps:$4 sm:$0xff]   ;;  %v2213_v3 = vld [vmem:[#allocation5] ss:$12 sps:$4 sm:$0xff]   ;;  %v2216_v4 = vld [vmem:[#allocation5 + $0x1c] ss:$12 sps:$4 sm:$0xff]  }
  0x29   :  { %1674 = vmatprep.mubr.msk.bf16.mxu1 %vm2150_vm0, %v2148_v0  ;;  %233 = vmatprep.subr.bf16.mxu0 %v2211_v2  ;;  %v2219_v5 = vld [vmem:[#allocation5 + $0x18] ss:$12 sps:$4 sm:$0xff]   ;;  %v2222_v6 = vld [vmem:[#allocation5 + $0x34] ss:$12 sps:$4 sm:$0xff]   ;;  %v2225_v7 = vld [vmem:[#allocation5 + $0x30] ss:$12 sps:$4 sm:$0xff]  }
  0x2a   :  { %234 = vmatpush1.bf16.msra.mxu0 %v2213_v3  ;;  %v2228_v8 = vld [vmem:[#allocation5 + $0x4c] ss:$12 sps:$4 sm:$0xff]   ;;  %v2230_v9 = vld [vmem:[#allocation5 + $0x8] ss:$12 sps:$4 sm:$0xff]   ;;  %v2237_v11 = vld [vmem:[#allocation5 + $0x64] ss:$12 sps:$4 sm:$0xff]  }
  0x2b   :  { %235 = vmatprep.subr.bf16.mxu0 %v2216_v4  ;;  %v2233_v10 = vld [vmem:[#allocation5 + $0x48] ss:$12 sps:$4 sm:$0xff]   ;;  %1659 = vmatpush3.bf16.msra.mxu1 %v2230_v9  ;;  %v2240_v12 = vld [vmem:[#allocation5 + $0x20] ss:$12 sps:$4 sm:$0xff]   ;;  %v2246_v14 = vld [vmem:[#allocation5 + $0x38] ss:$12 sps:$4 sm:$0xff]  }
  0x2c   :  { %1660 = vmatprep.subr.bf16.mxu1 %v2148_v0  ;;  %v2242_v13 = vld [vmem:[#allocation5 + $0x60] ss:$12 sps:$4 sm:$0xff]   ;;  %v2249_v15 = vld [vmem:[#allocation5 + $0x7c] ss:$12 sps:$4 sm:$0xff]   ;;  %v2253_v16 = vld [vmem:[#allocation5 + $0x78] ss:$12 sps:$4 sm:$0xff]  }
  0x2d   :  { %v2256_v17 = vld [vmem:[#allocation5 + $0x50] ss:$12 sps:$4 sm:$0xff]   ;;  %v2259_v18 = vld [vmem:[#allocation5 + $0x94] ss:$12 sps:$4 sm:$0xff]   ;;  %v2269_v21 = vld [vmem:[#allocation5 + $0xac] ss:$12 sps:$4 sm:$0xff]  }
  0x2e   :  { %236 = vmatpush1.bf16.msra.mxu0 %v2219_v5  ;;  %v2263_v19 = vld [vmem:[#allocation5 + $0x90] ss:$12 sps:$4 sm:$0xff]   ;;  %v2266_v20 = vld [vmem:[#allocation5 + $0x68] ss:$12 sps:$4 sm:$0xff]   ;;  %v2276_v23 = vld [vmem:[#allocation5 + $0x80] ss:$12 sps:$4 sm:$0xff]  }
  0x2f   :  { %237 = vmatprep.subr.bf16.mxu0 %v2222_v6  ;;  %1661 = vmatpush3.bf16.msra.mxu1 %v2240_v12  ;;  %v2273_v22 = vld [vmem:[#allocation5 + $0xa8] ss:$12 sps:$4 sm:$0xff]   ;;  %v2282_v24 = vld [vmem:[#allocation5 + $0x98] ss:$12 sps:$4 sm:$0xff]   ;;  %v2287_v26 = vld [vmem:[#allocation5 + $0xb0] ss:$12 sps:$4 sm:$0xff]  }
  0x30   :  { %1662 = vmatprep.subr.bf16.mxu1 %v2148_v0  ;;  %v94_v27 = vld [vmem:[#allocation2] sm:$0xff]  ;;  %v96_v28 = vld [vmem:[#allocation2 + $0xc] sm:$0xff]  ;;  %v95_v56 = vld [vmem:[#allocation2 + $0x8] ss:$12 sps:$4 sm:$0xff]   ;;  %s2153_s18 = smov [#allocation7]  }
  0x31   :  { %v98_v29 = vunpack.c.l.bf16 %v94_v27  ;;  %v101_v30 = vunpack.c.l.bf16 %v96_v28  ;;  %v99_v32 = vunpack.c.h.bf16 %v94_v27  ;;  %v102_v36 = vunpack.c.h.bf16 %v96_v28  ;;  %v2330_v54 = vld [vmem:[%s2694_s2] ss:$0 sm:$0xff]  ;;  %s1428_s19 = sshll.u32 %s2153_s18, 4  ;;  %s2661_s19 = int_to_ptr.vmem [resolvable:$true] %s1428_s19 }
  0x32   :  { %238 = vmatpush1.bf16.msra.mxu0 %v2225_v7  ;;  %v100_v60 = vunpack.c.l.bf16 %v95_v56  ;;  %v103_v63 = vunpack.c.h.bf16 %v95_v56 }
  0x33   :  { %239 = vmatprep.subr.bf16.mxu0 %v2228_v8  ;;  %1663 = vmatpush3.bf16.msra.mxu1 %v2246_v14 }
  0x34   :  { %1664 = vmatprep.subr.bf16.mxu1 %v2148_v0 }
  0x36   :  { %240 = vmatpush1.bf16.msra.mxu0 %v2233_v10 }
  0x37   :  { %241 = vmatprep.subr.bf16.mxu0 %v2237_v11  ;;  %1665 = vmatpush3.bf16.msra.mxu1 %v2256_v17 }
  0x38   :  { %1666 = vmatprep.subr.bf16.mxu1 %v2148_v0 }
  0x3a   :  { %242 = vmatpush1.bf16.msra.mxu0 %v2242_v13 }
  0x3b   :  { %243 = vmatprep.subr.bf16.mxu0 %v2249_v15  ;;  %1667 = vmatpush3.bf16.msra.mxu1 %v2266_v20 }
  0x3c   :  { %1668 = vmatprep.subr.bf16.mxu1 %v2148_v0 }
  0x3e   :  { %244 = vmatpush1.bf16.msra.mxu0 %v2253_v16 }
  0x3f   :  { %245 = vmatprep.subr.bf16.mxu0 %v2259_v18  ;;  %1669 = vmatpush3.bf16.msra.mxu1 %v2276_v23 }
  0x40   :  { %1670 = vmatprep.subr.bf16.mxu1 %v2148_v0 }
  0x42   :  { %246 = vmatpush1.bf16.msra.mxu0 %v2263_v19 }
  0x43   :  { %247 = vmatprep.subr.bf16.mxu0 %v2269_v21  ;;  %1671 = vmatpush3.bf16.msra.mxu1 %v2282_v24 }
  0x44   :  { %1672 = vmatprep.subr.bf16.mxu1 %v2148_v0 }
  0x46   :  { %248 = vmatpush1.bf16.msra.mxu0 %v2273_v22 }
  0x47   :  { %382 = vmatprep.subr.bf16.mxu0 %v2211_v2  ;;  %1673 = vmatpush3.bf16.msra.mxu1 %v2287_v26 }
  0x48   :  { %1678 = vmatprep.subr.bf16.mxu1 %v2148_v0 }
  0x49   :  { %266 = vmatmul.mubr.bf16.vlgmr.msra.gmra.mrb[0].mxu0 %v2151_v25 }
  0x4a   :  { %383 = vmatpush1.bf16.msra.mxu0 %v2213_v3  ;;  %414 = vmatprep.mubr.bf16.mxu0 %v2149_v1 }
  0x4b   :  { %384 = vmatprep.subr.bf16.mxu0 %v2216_v4  ;;  %1675 = vmatmul.mubr.bf16.vlgmr.msra.gmra.mrb[0].mxu1 %v2151_v25 }
  0x4c   :  { %1679 = vmatpush3.bf16.msra.mxu1 %v2230_v9  ;;  %1694 = vmatprep.mubr.msk.bf16.mxu1 %vm2150_vm0, %v2148_v0 }
  0x4d   :  { %1680 = vmatprep.subr.bf16.mxu1 %v2148_v0 }
  0x4e   :  { %385 = vmatpush1.bf16.msra.mxu0 %v2219_v5 }
  0x4f   :  { %386 = vmatprep.subr.bf16.mxu0 %v2222_v6 }
  0x50   :  { %1681 = vmatpush3.bf16.msra.mxu1 %v2240_v12 }
  0x51   :  { %1682 = vmatprep.subr.bf16.mxu1 %v2148_v0 }
  0x52   :  { %387 = vmatpush1.bf16.msra.mxu0 %v2225_v7 }
  0x53   :  { %388 = vmatprep.subr.bf16.mxu0 %v2228_v8 }
  0x54   :  { %1683 = vmatpush3.bf16.msra.mxu1 %v2246_v14 }
  0x55   :  { %1684 = vmatprep.subr.bf16.mxu1 %v2148_v0 }
  0x56   :  { %389 = vmatpush1.bf16.msra.mxu0 %v2233_v10 }
  0x57   :  { %390 = vmatprep.subr.bf16.mxu0 %v2237_v11 }
  0x58   :  { %1685 = vmatpush3.bf16.msra.mxu1 %v2256_v17 }
  0x59   :  { %1686 = vmatprep.subr.bf16.mxu1 %v2148_v0 }
  0x5a   :  { %391 = vmatpush1.bf16.msra.mxu0 %v2242_v13 }
  0x5b   :  { %392 = vmatprep.subr.bf16.mxu0 %v2249_v15 }
  0x5c   :  { %1687 = vmatpush3.bf16.msra.mxu1 %v2266_v20 }
  0x5d   :  { %1688 = vmatprep.subr.bf16.mxu1 %v2148_v0 }
  0x5e   :  { %393 = vmatpush1.bf16.msra.mxu0 %v2253_v16 }
  0x5f   :  { %394 = vmatprep.subr.bf16.mxu0 %v2259_v18 }
  0x60   :  { %1689 = vmatpush3.bf16.msra.mxu1 %v2276_v23 }
  0x61   :  { %1690 = vmatprep.subr.bf16.mxu1 %v2148_v0 }
  0x62   :  { %395 = vmatpush1.bf16.msra.mxu0 %v2263_v19 }
  0x63   :  { %396 = vmatprep.subr.bf16.mxu0 %v2269_v21 }
  0x64   :  { %1691 = vmatpush3.bf16.msra.mxu1 %v2282_v24 }
  0x65   :  { %1692 = vmatprep.subr.bf16.mxu1 %v2148_v0 }
  0x66   :  { %397 = vmatpush1.bf16.msra.mxu0 %v2273_v22 }
  0x67   :  { %532 = vmatprep.subr.bf16.mxu0 %v2211_v2 }
  0x68   :  { %1693 = vmatpush3.bf16.msra.mxu1 %v2287_v26 }
  0x69   :  { %1698 = vmatprep.subr.bf16.mxu1 %v2148_v0 }
 0x11c   :  { %v267_v31 = vpop.f32.mrb[0].mxu0 }
 0x11d   :  { %v317_v33 = vadd.f32 %v267_v31, %v98_v29  ;;  %v269_v34 = vpop.f32.mrb[1].mxu0 }
 0x11e   :  { %v271_v35 = vpop.f32.mrb[2].mxu0  ;;  %v331_v40 = vadd.f32 %v269_v34, %v99_v32  ;;  %v310_v44 = vpop.f32.mrb[0].mxu1 }
 0x11f   :  { %v1482_v37 = vmul.f32 -1.442695, %v317_v33  ;;  %v318_v38 = vadd.f32 %v271_v35, %v101_v30  ;;  %v273_v39 = vpop.f32.mrb[3].mxu0  ;;  %v1676_v45 = vpop.f32.mrb[1].mxu1  ;;  %v345_v58 = vadd.f32 %v2330_v54, %v310_v44  ;;  %v372_v44 = vld [vmem:[#allocation2 + $0x18] sm:$0xff] }
 0x120   :  { %v332_v42 = vadd.f32 %v273_v39, %v102_v36  ;;  %v1484_v43 = vmul.f32 -1.442695, %v331_v40  ;;  %v313_v47 = vpop.f32.mrb[2].mxu1  ;;  %v374_v45 = vld [vmem:[#allocation2 + $0x24] sm:$0xff] }
 0x121   :  { %1863 = vpow2.f32 %v1482_v37  ;;  %v1483_v41 = vmul.f32 -1.442695, %v318_v38  ;;  %v1677_v48 = vpop.f32.mrb[3].mxu1  ;;  %v346_v25 = vadd.f32 %v2330_v54, %v313_v47  ;;  %v379_v47 = vunpack.c.l.bf16 %v374_v45 }
 0x122   :  { %v1485_v46 = vmul.f32 -1.442695, %v332_v42 }
 0x123   :  { %1865 = vpow2.f32 %v1483_v41 }
 0x124   :  { %1867 = vpow2.f32 %v1484_v43 }
 0x125   :  { %1869 = vpow2.f32 %v1485_v46  ;;  %v376_v46 = vunpack.c.l.bf16 %v372_v44 }
 0x12b   :  { %v1864_v49 = vpop.eup %1863 }
 0x12c   :  { %v325_v50 = vadd.f32 1.0, %v1864_v49 }
 0x12d   :  { %v1866_v51 = vpop.eup %1865 }
 0x12e   :  { %1871 = vrcp.f32 %v325_v50  ;;  %v326_v52 = vadd.f32 1.0, %v1866_v51  ;;  %v1868_v53 = vpop.eup %1867  ;;  %v377_v50 = vunpack.c.h.bf16 %v372_v44 }
 0x12f   :  { %v1870_v55 = vpop.eup %1869  ;;  %v339_v57 = vadd.f32 1.0, %v1868_v53 }
 0x130   :  { %1873 = vrcp.f32 %v326_v52  ;;  %v340_v59 = vadd.f32 1.0, %v1870_v55 }
 0x131   :  { %1875 = vrcp.f32 %v339_v57  ;;  %v380_v57 = vunpack.c.h.bf16 %v374_v45 }
 0x132   :  { %1877 = vrcp.f32 %v340_v59 }
 0x138   :  { %v1872_v61 = vpop.eup %1871 }
 0x139   :  { %v347_v62 = vmul.f32 %v1872_v61, %v345_v58 }
 0x13a   :  { %v1874_v27 = vpop.eup %1873 }
 0x13b   :  { %v349_v28 = vadd.f32 %v347_v62, %v100_v60  ;;  %v348_v29 = vmul.f32 %v1874_v27, %v346_v25  ;;  %v1876_v31 = vpop.eup %1875 }
 0x13c   :  { %v1878_v32 = vpop.eup %1877  ;;  %v353_v33 = vsub.f32 1.0, %v1876_v31  ;;  %v357_v37 = vmul.f32 0.0, %v1876_v31 }
 0x13d   :  { %1879 = vtanh.f32 %v349_v28  ;;  %v350_v30 = vadd.f32 %v348_v29, %v103_v63  ;;  %v354_v35 = vsub.f32 1.0, %v1878_v32  ;;  %v358_v40 = vmul.f32 0.0, %v1878_v32 }
 0x13f   :  { %1881 = vtanh.f32 %v350_v30 }
 0x147   :  { %v1880_v34 = vpop.eup %1879 }
 0x148   :  { %v355_v36 = vmul.f32 %v1880_v34, %v353_v33 }
 0x149   :  { %v1882_v38 = vpop.eup %1881 }
 0x14a   :  { %v356_v39 = vmul.f32 %v1882_v38, %v354_v35  ;;  %v2334_v41 = vadd.f32 %v357_v37, %v355_v36  ;;  %v373_v35 = vld [vmem:[#allocation2 + $0x20] ss:$12 sps:$4 sm:$0xff]  }
 0x14b   :  { %v378_v37 = vunpack.c.l.bf16 %v373_v35  ;;  %v381_v44 = vunpack.c.h.bf16 %v373_v35 }
 0x14c   :  { %v2336_v42 = vadd.f32 %v358_v40, %v356_v39 }
 0x14e   :  { %v361_v43 = vpack.c.bf16 %v2336_v42, %v2334_v41 }
 0x150   :  { %1550 = vst [vmem:[#allocation7] sm:$0xff] %v361_v43   ;;  %415 = vmatmul.mubr.bf16.vlgmr.msra.gmra.mrb[4].mxu0 %v361_v43  ;;  %1695 = vmatmul.mubr.bf16.vlgmr.msra.gmra.mrb[4].mxu1 %v361_v43 }
 0x151   :  { %533 = vmatpush1.bf16.msra.mxu0 %v2213_v3  ;;  %1699 = vmatpush3.bf16.msra.mxu1 %v2230_v9 }
 0x152   :  { %534 = vmatprep.subr.bf16.mxu0 %v2216_v4  ;;  %1700 = vmatprep.subr.bf16.mxu1 %v2148_v0 }
 0x153   :  { %564 = vmatprep.mubr.bf16.mxu0 %v2149_v1  ;;  %1714 = vmatprep.mubr.msk.bf16.mxu1 %vm2150_vm0, %v2148_v0 }
 0x155   :  { %535 = vmatpush1.bf16.msra.mxu0 %v2219_v5  ;;  %1701 = vmatpush3.bf16.msra.mxu1 %v2240_v12 }
 0x156   :  { %536 = vmatprep.subr.bf16.mxu0 %v2222_v6  ;;  %1702 = vmatprep.subr.bf16.mxu1 %v2148_v0 }
 0x159   :  { %537 = vmatpush1.bf16.msra.mxu0 %v2225_v7  ;;  %1703 = vmatpush3.bf16.msra.mxu1 %v2246_v14 }
 0x15a   :  { %538 = vmatprep.subr.bf16.mxu0 %v2228_v8  ;;  %1704 = vmatprep.subr.bf16.mxu1 %v2148_v0 }
 0x15d   :  { %539 = vmatpush1.bf16.msra.mxu0 %v2233_v10  ;;  %1705 = vmatpush3.bf16.msra.mxu1 %v2256_v17 }
 0x15e   :  { %540 = vmatprep.subr.bf16.mxu0 %v2237_v11  ;;  %1706 = vmatprep.subr.bf16.mxu1 %v2148_v0 }
 0x161   :  { %541 = vmatpush1.bf16.msra.mxu0 %v2242_v13  ;;  %1707 = vmatpush3.bf16.msra.mxu1 %v2266_v20 }
 0x162   :  { %542 = vmatprep.subr.bf16.mxu0 %v2249_v15  ;;  %1708 = vmatprep.subr.bf16.mxu1 %v2148_v0 }
 0x165   :  { %543 = vmatpush1.bf16.msra.mxu0 %v2253_v16  ;;  %1709 = vmatpush3.bf16.msra.mxu1 %v2276_v23 }
 0x166   :  { %544 = vmatprep.subr.bf16.mxu0 %v2259_v18  ;;  %1710 = vmatprep.subr.bf16.mxu1 %v2148_v0 }
 0x169   :  { %545 = vmatpush1.bf16.msra.mxu0 %v2263_v19  ;;  %1711 = vmatpush3.bf16.msra.mxu1 %v2282_v24 }
 0x16a   :  { %546 = vmatprep.subr.bf16.mxu0 %v2269_v21  ;;  %1712 = vmatprep.subr.bf16.mxu1 %v2148_v0 }
 0x16d   :  { %547 = vmatpush1.bf16.msra.mxu0 %v2273_v22  ;;  %1713 = vmatpush3.bf16.msra.mxu1 %v2287_v26 }
 0x16e   :  { %682 = vmatprep.subr.bf16.mxu0 %v2211_v2  ;;  %1718 = vmatprep.subr.bf16.mxu1 %v2148_v0 }
 0x223   :  { %v416_v48 = vpop.f32.mrb[4].mxu0  ;;  %v459_v49 = vpop.f32.mrb[4].mxu1 }
 0x224   :  { %v466_v51 = vadd.f32 %v416_v48, %v376_v46  ;;  %v418_v52 = vpop.f32.mrb[5].mxu0  ;;  %v1696_v53 = vpop.f32.mrb[5].mxu1  ;;  %v494_v38 = vadd.f32 %v2330_v54, %v459_v49 }
 0x225   :  { %v420_v55 = vpop.f32.mrb[6].mxu0  ;;  %v462_v56 = vpop.f32.mrb[6].mxu1  ;;  %v480_v62 = vadd.f32 %v418_v52, %v377_v50 }
 0x226   :  { %v1488_v58 = vmul.f32 -1.442695, %v466_v51  ;;  %v467_v59 = vadd.f32 %v420_v55, %v379_v47  ;;  %v422_v60 = vpop.f32.mrb[7].mxu0  ;;  %v1697_v61 = vpop.f32.mrb[7].mxu1  ;;  %v495_v45 = vadd.f32 %v2330_v54, %v462_v56 }
 0x227   :  { %v481_v25 = vadd.f32 %v422_v60, %v380_v57  ;;  %v1490_v27 = vmul.f32 -1.442695, %v480_v62 }
 0x228   :  { %1883 = vpow2.f32 %v1488_v58  ;;  %v1489_v63 = vmul.f32 -1.442695, %v467_v59 }
 0x229   :  { %v1491_v28 = vmul.f32 -1.442695, %v481_v25 }
 0x22a   :  { %1885 = vpow2.f32 %v1489_v63 }
 0x22b   :  { %1887 = vpow2.f32 %v1490_v27 }
 0x22c   :  { %1889 = vpow2.f32 %v1491_v28 }
 0x232   :  { %v1884_v29 = vpop.eup %1883 }
 0x233   :  { %v474_v30 = vadd.f32 1.0, %v1884_v29 }
 0x234   :  { %v1886_v31 = vpop.eup %1885 }
 0x235   :  { %1891 = vrcp.f32 %v474_v30  ;;  %v475_v32 = vadd.f32 1.0, %v1886_v31  ;;  %v1888_v33 = vpop.eup %1887 }
 0x236   :  { %v1890_v34 = vpop.eup %1889  ;;  %v488_v36 = vadd.f32 1.0, %v1888_v33 }
 0x237   :  { %1893 = vrcp.f32 %v475_v32  ;;  %v489_v39 = vadd.f32 1.0, %v1890_v34 }
 0x238   :  { %1895 = vrcp.f32 %v488_v36 }
 0x239   :  { %1897 = vrcp.f32 %v489_v39 }
 0x23f   :  { %v1892_v40 = vpop.eup %1891 }
 0x240   :  { %v496_v43 = vmul.f32 %v1892_v40, %v494_v38 }
 0x241   :  { %v1894_v46 = vpop.eup %1893 }
 0x242   :  { %v498_v47 = vadd.f32 %v496_v43, %v378_v37  ;;  %v497_v48 = vmul.f32 %v1894_v46, %v495_v45  ;;  %v1896_v51 = vpop.eup %1895 }
 0x243   :  { %v1898_v52 = vpop.eup %1897  ;;  %v502_v53 = vsub.f32 1.0, %v1896_v51  ;;  %v506_v58 = vmul.f32 %v1896_v51, %v2334_v41  ;;  %v522_v41 = vld [vmem:[#allocation2 + $0x30] sm:$0xff] }
 0x244   :  { %1899 = vtanh.f32 %v498_v47  ;;  %v499_v50 = vadd.f32 %v497_v48, %v381_v44  ;;  %v503_v57 = vsub.f32 1.0, %v1898_v52  ;;  %v507_v61 = vmul.f32 %v1898_v52, %v2336_v42  ;;  %v524_v42 = vld [vmem:[#allocation2 + $0x3c] sm:$0xff] }
 0x245   :  { %v526_v25 = vunpack.c.l.bf16 %v522_v41  ;;  %v529_v27 = vunpack.c.l.bf16 %v524_v42  ;;  %v527_v30 = vunpack.c.h.bf16 %v522_v41  ;;  %v530_v36 = vunpack.c.h.bf16 %v524_v42 }
 0x246   :  { %1901 = vtanh.f32 %v499_v50 }
 0x24e   :  { %v1900_v55 = vpop.eup %1899 }
 0x24f   :  { %v504_v49 = vmul.f32 %v1900_v55, %v502_v53 }
 0x250   :  { %v1902_v59 = vpop.eup %1901 }
 0x251   :  { %v505_v60 = vmul.f32 %v1902_v59, %v503_v57  ;;  %v2379_v56 = vadd.f32 %v506_v58, %v504_v49  ;;  %v523_v57 = vld [vmem:[#allocation2 + $0x38] ss:$12 sps:$4 sm:$0xff]  }
 0x252   :  { %v528_v58 = vunpack.c.l.bf16 %v523_v57  ;;  %v531_v41 = vunpack.c.h.bf16 %v523_v57 }
 0x253   :  { %v2381_v62 = vadd.f32 %v507_v61, %v505_v60 }
 0x255   :  { %v510_v63 = vpack.c.bf16 %v2381_v62, %v2379_v56 }
 0x257   :  { %1555 = vst [vmem:[#allocation7 + $0x8] sm:$0xff] %v510_v63   ;;  %565 = vmatmul.mubr.bf16.vlgmr.msra.gmra.mrb[8].mxu0 %v510_v63  ;;  %1715 = vmatmul.mubr.bf16.vlgmr.msra.gmra.mrb[8].mxu1 %v510_v63 }
 0x258   :  { %683 = vmatpush1.bf16.msra.mxu0 %v2213_v3  ;;  %1719 = vmatpush3.bf16.msra.mxu1 %v2230_v9 }
 0x259   :  { %684 = vmatprep.subr.bf16.mxu0 %v2216_v4  ;;  %1720 = vmatprep.subr.bf16.mxu1 %v2148_v0 }
 0x25a   :  { %714 = vmatprep.mubr.bf16.mxu0 %v2149_v1  ;;  %1734 = vmatprep.mubr.msk.bf16.mxu1 %vm2150_vm0, %v2148_v0 }
 0x25c   :  { %685 = vmatpush1.bf16.msra.mxu0 %v2219_v5  ;;  %1721 = vmatpush3.bf16.msra.mxu1 %v2240_v12 }
 0x25d   :  { %686 = vmatprep.subr.bf16.mxu0 %v2222_v6  ;;  %1722 = vmatprep.subr.bf16.mxu1 %v2148_v0 }
 0x260   :  { %687 = vmatpush1.bf16.msra.mxu0 %v2225_v7  ;;  %1723 = vmatpush3.bf16.msra.mxu1 %v2246_v14 }
 0x261   :  { %688 = vmatprep.subr.bf16.mxu0 %v2228_v8  ;;  %1724 = vmatprep.subr.bf16.mxu1 %v2148_v0 }
 0x264   :  { %689 = vmatpush1.bf16.msra.mxu0 %v2233_v10  ;;  %1725 = vmatpush3.bf16.msra.mxu1 %v2256_v17 }
 0x265   :  { %690 = vmatprep.subr.bf16.mxu0 %v2237_v11  ;;  %1726 = vmatprep.subr.bf16.mxu1 %v2148_v0 }
 0x268   :  { %691 = vmatpush1.bf16.msra.mxu0 %v2242_v13  ;;  %1727 = vmatpush3.bf16.msra.mxu1 %v2266_v20 }
 0x269   :  { %692 = vmatprep.subr.bf16.mxu0 %v2249_v15  ;;  %1728 = vmatprep.subr.bf16.mxu1 %v2148_v0 }
 0x26c   :  { %693 = vmatpush1.bf16.msra.mxu0 %v2253_v16  ;;  %1729 = vmatpush3.bf16.msra.mxu1 %v2276_v23 }
 0x26d   :  { %694 = vmatprep.subr.bf16.mxu0 %v2259_v18  ;;  %1730 = vmatprep.subr.bf16.mxu1 %v2148_v0 }
 0x270   :  { %695 = vmatpush1.bf16.msra.mxu0 %v2263_v19  ;;  %1731 = vmatpush3.bf16.msra.mxu1 %v2282_v24 }
 0x271   :  { %696 = vmatprep.subr.bf16.mxu0 %v2269_v21  ;;  %1732 = vmatprep.subr.bf16.mxu1 %v2148_v0 }
 0x274   :  { %697 = vmatpush1.bf16.msra.mxu0 %v2273_v22  ;;  %1733 = vmatpush3.bf16.msra.mxu1 %v2287_v26 }
 0x275   :  { %832 = vmatprep.subr.bf16.mxu0 %v2211_v2  ;;  %1738 = vmatprep.subr.bf16.mxu1 %v2148_v0 }
 0x32a   :  { %v566_v28 = vpop.f32.mrb[8].mxu0  ;;  %v609_v29 = vpop.f32.mrb[8].mxu1 }
 0x32b   :  { %v616_v31 = vadd.f32 %v566_v28, %v526_v25  ;;  %v568_v32 = vpop.f32.mrb[9].mxu0  ;;  %v1716_v33 = vpop.f32.mrb[9].mxu1  ;;  %v644_v59 = vadd.f32 %v2330_v54, %v609_v29 }
 0x32c   :  { %v570_v34 = vpop.f32.mrb[10].mxu0  ;;  %v612_v35 = vpop.f32.mrb[10].mxu1  ;;  %v630_v43 = vadd.f32 %v568_v32, %v527_v30 }
 0x32d   :  { %v1494_v37 = vmul.f32 -1.442695, %v616_v31  ;;  %v617_v38 = vadd.f32 %v570_v34, %v529_v27  ;;  %v572_v39 = vpop.f32.mrb[11].mxu0  ;;  %v1717_v40 = vpop.f32.mrb[11].mxu1  ;;  %v645_v42 = vadd.f32 %v2330_v54, %v612_v35 }
 0x32e   :  { %v631_v45 = vadd.f32 %v572_v39, %v530_v36  ;;  %v1496_v46 = vmul.f32 -1.442695, %v630_v43 }
 0x32f   :  { %1903 = vpow2.f32 %v1494_v37  ;;  %v1495_v44 = vmul.f32 -1.442695, %v617_v38 }
 0x330   :  { %v1497_v47 = vmul.f32 -1.442695, %v631_v45 }
 0x331   :  { %1905 = vpow2.f32 %v1495_v44 }
 0x332   :  { %1907 = vpow2.f32 %v1496_v46 }
 0x333   :  { %1909 = vpow2.f32 %v1497_v47 }
 0x339   :  { %v1904_v48 = vpop.eup %1903 }
 0x33a   :  { %v624_v50 = vadd.f32 1.0, %v1904_v48 }
 0x33b   :  { %v1906_v51 = vpop.eup %1905 }
 0x33c   :  { %1911 = vrcp.f32 %v624_v50  ;;  %v625_v52 = vadd.f32 1.0, %v1906_v51  ;;  %v1908_v53 = vpop.eup %1907 }
 0x33d   :  { %v1910_v55 = vpop.eup %1909  ;;  %v638_v49 = vadd.f32 1.0, %v1908_v53 }
 0x33e   :  { %1913 = vrcp.f32 %v625_v52  ;;  %v639_v60 = vadd.f32 1.0, %v1910_v55 }
 0x33f   :  { %1915 = vrcp.f32 %v638_v49 }
 0x340   :  { %1917 = vrcp.f32 %v639_v60 }
 0x346   :  { %v1912_v61 = vpop.eup %1911 }
 0x347   :  { %v646_v63 = vmul.f32 %v1912_v61, %v644_v59 }
 0x348   :  { %v1914_v25 = vpop.eup %1913 }
 0x349   :  { %v648_v27 = vadd.f32 %v646_v63, %v528_v58  ;;  %v647_v28 = vmul.f32 %v1914_v25, %v645_v42  ;;  %v1916_v31 = vpop.eup %1915 }
 0x34a   :  { %v1918_v32 = vpop.eup %1917  ;;  %v652_v33 = vsub.f32 1.0, %v1916_v31  ;;  %v656_v37 = vmul.f32 %v1916_v31, %v2379_v56  ;;  %v672_v56 = vld [vmem:[#allocation2 + $0x48] sm:$0xff] }
 0x34b   :  { %1919 = vtanh.f32 %v648_v27  ;;  %v649_v30 = vadd.f32 %v647_v28, %v531_v41  ;;  %v653_v36 = vsub.f32 1.0, %v1918_v32  ;;  %v657_v40 = vmul.f32 %v1918_v32, %v2381_v62  ;;  %v674_v62 = vld [vmem:[#allocation2 + $0x54] sm:$0xff] }
 0x34c   :  { %v676_v45 = vunpack.c.l.bf16 %v672_v56  ;;  %v679_v46 = vunpack.c.l.bf16 %v674_v62  ;;  %v677_v50 = vunpack.c.h.bf16 %v672_v56  ;;  %v680_v49 = vunpack.c.h.bf16 %v674_v62 }
 0x34d   :  { %1921 = vtanh.f32 %v649_v30 }
 0x355   :  { %v1920_v34 = vpop.eup %1919 }
 0x356   :  { %v654_v29 = vmul.f32 %v1920_v34, %v652_v33  ;;  %v673_v34 = vld [vmem:[#allocation2 + $0x50] ss:$12 sps:$4 sm:$0xff]  }
 0x357   :  { %v1922_v38 = vpop.eup %1921 }
 0x358   :  { %v655_v39 = vmul.f32 %v1922_v38, %v653_v36  ;;  %v2424_v35 = vadd.f32 %v656_v37, %v654_v29  ;;  %v678_v29 = vunpack.c.l.bf16 %v673_v34 }
 0x35a   :  { %v2426_v43 = vadd.f32 %v657_v40, %v655_v39 }
 0x35c   :  { %v660_v44 = vpack.c.bf16 %v2426_v43, %v2424_v35 }
 0x35e   :  { %1560 = vst [vmem:[#allocation7 + $0x10] sm:$0xff] %v660_v44   ;;  %715 = vmatmul.mubr.bf16.vlgmr.msra.gmra.mrb[12].mxu0 %v660_v44  ;;  %1735 = vmatmul.mubr.bf16.vlgmr.msra.gmra.mrb[12].mxu1 %v660_v44  ;;  %v681_v44 = vunpack.c.h.bf16 %v673_v34 }
 0x35f   :  { %833 = vmatpush1.bf16.msra.mxu0 %v2213_v3  ;;  %1739 = vmatpush3.bf16.msra.mxu1 %v2230_v9 }
 0x360   :  { %834 = vmatprep.subr.bf16.mxu0 %v2216_v4  ;;  %1740 = vmatprep.subr.bf16.mxu1 %v2148_v0 }
 0x361   :  { %864 = vmatprep.mubr.bf16.mxu0 %v2149_v1  ;;  %1754 = vmatprep.mubr.msk.bf16.mxu1 %vm2150_vm0, %v2148_v0 }
 0x363   :  { %835 = vmatpush1.bf16.msra.mxu0 %v2219_v5  ;;  %1741 = vmatpush3.bf16.msra.mxu1 %v2240_v12 }
 0x364   :  { %836 = vmatprep.subr.bf16.mxu0 %v2222_v6  ;;  %1742 = vmatprep.subr.bf16.mxu1 %v2148_v0 }
 0x367   :  { %837 = vmatpush1.bf16.msra.mxu0 %v2225_v7  ;;  %1743 = vmatpush3.bf16.msra.mxu1 %v2246_v14 }
 0x368   :  { %838 = vmatprep.subr.bf16.mxu0 %v2228_v8  ;;  %1744 = vmatprep.subr.bf16.mxu1 %v2148_v0 }
 0x36b   :  { %839 = vmatpush1.bf16.msra.mxu0 %v2233_v10  ;;  %1745 = vmatpush3.bf16.msra.mxu1 %v2256_v17 }
 0x36c   :  { %840 = vmatprep.subr.bf16.mxu0 %v2237_v11  ;;  %1746 = vmatprep.subr.bf16.mxu1 %v2148_v0 }
 0x36f   :  { %841 = vmatpush1.bf16.msra.mxu0 %v2242_v13  ;;  %1747 = vmatpush3.bf16.msra.mxu1 %v2266_v20 }
 0x370   :  { %842 = vmatprep.subr.bf16.mxu0 %v2249_v15  ;;  %1748 = vmatprep.subr.bf16.mxu1 %v2148_v0 }
 0x373   :  { %843 = vmatpush1.bf16.msra.mxu0 %v2253_v16  ;;  %1749 = vmatpush3.bf16.msra.mxu1 %v2276_v23 }
 0x374   :  { %844 = vmatprep.subr.bf16.mxu0 %v2259_v18  ;;  %1750 = vmatprep.subr.bf16.mxu1 %v2148_v0 }
 0x377   :  { %845 = vmatpush1.bf16.msra.mxu0 %v2263_v19  ;;  %1751 = vmatpush3.bf16.msra.mxu1 %v2282_v24 }
 0x378   :  { %846 = vmatprep.subr.bf16.mxu0 %v2269_v21  ;;  %1752 = vmatprep.subr.bf16.mxu1 %v2148_v0 }
 0x37b   :  { %847 = vmatpush1.bf16.msra.mxu0 %v2273_v22  ;;  %1753 = vmatpush3.bf16.msra.mxu1 %v2287_v26 }
 0x37c   :  { %982 = vmatprep.subr.bf16.mxu0 %v2211_v2  ;;  %1758 = vmatprep.subr.bf16.mxu1 %v2148_v0 }
 0x431   :  { %v716_v47 = vpop.f32.mrb[12].mxu0  ;;  %v759_v48 = vpop.f32.mrb[12].mxu1 }
 0x432   :  { %v766_v51 = vadd.f32 %v716_v47, %v676_v45  ;;  %v718_v52 = vpop.f32.mrb[13].mxu0  ;;  %v1736_v53 = vpop.f32.mrb[13].mxu1  ;;  %v794_v37 = vadd.f32 %v2330_v54, %v759_v48 }
 0x433   :  { %v720_v55 = vpop.f32.mrb[14].mxu0  ;;  %v762_v57 = vpop.f32.mrb[14].mxu1  ;;  %v780_v2 = vadd.f32 %v718_v52, %v677_v50 }
 0x434   :  { %v1500_v58 = vmul.f32 -1.442695, %v766_v51  ;;  %v767_v59 = vadd.f32 %v720_v55, %v679_v46  ;;  %v722_v60 = vpop.f32.mrb[15].mxu0  ;;  %v1737_v61 = vpop.f32.mrb[15].mxu1  ;;  %v795_v56 = vadd.f32 %v2330_v54, %v762_v57 }
 0x435   :  { %v781_v41 = vadd.f32 %v722_v60, %v680_v49  ;;  %v1502_v42 = vmul.f32 -1.442695, %v780_v2 }
 0x436   :  { %1923 = vpow2.f32 %v1500_v58  ;;  %v1501_v63 = vmul.f32 -1.442695, %v767_v59 }
 0x437   :  { %v1503_v25 = vmul.f32 -1.442695, %v781_v41 }
 0x438   :  { %1925 = vpow2.f32 %v1501_v63 }
 0x439   :  { %1927 = vpow2.f32 %v1502_v42 }
 0x43a   :  { %1929 = vpow2.f32 %v1503_v25 }
 0x440   :  { %v1924_v27 = vpop.eup %1923 }
 0x441   :  { %v774_v28 = vadd.f32 1.0, %v1924_v27  ;;  %v823_v27 = vld [vmem:[#allocation2 + $0x68] ss:$12 sps:$4 sm:$0xff]  }
 0x442   :  { %v1926_v30 = vpop.eup %1925 }
 0x443   :  { %1931 = vrcp.f32 %v774_v28  ;;  %v775_v31 = vadd.f32 1.0, %v1926_v30  ;;  %v1928_v32 = vpop.eup %1927  ;;  %v828_v30 = vunpack.c.l.bf16 %v823_v27 }
 0x444   :  { %v1930_v33 = vpop.eup %1929  ;;  %v788_v36 = vadd.f32 1.0, %v1928_v32 }
 0x445   :  { %1933 = vrcp.f32 %v775_v31  ;;  %v789_v38 = vadd.f32 1.0, %v1930_v33 }
 0x446   :  { %1935 = vrcp.f32 %v788_v36  ;;  %v831_v36 = vunpack.c.h.bf16 %v823_v27 }
 0x447   :  { %1937 = vrcp.f32 %v789_v38 }
 0x44d   :  { %v1932_v39 = vpop.eup %1931 }
 0x44e   :  { %v796_v40 = vmul.f32 %v1932_v39, %v794_v37 }
 0x44f   :  { %v1934_v62 = vpop.eup %1933 }
 0x450   :  { %v798_v45 = vadd.f32 %v796_v40, %v678_v29  ;;  %v797_v46 = vmul.f32 %v1934_v62, %v795_v56  ;;  %v1936_v50 = vpop.eup %1935 }
 0x451   :  { %v1938_v51 = vpop.eup %1937  ;;  %v802_v52 = vsub.f32 1.0, %v1936_v50  ;;  %v806_v49 = vmul.f32 %v1936_v50, %v2424_v35 }
 0x452   :  { %1939 = vtanh.f32 %v798_v45  ;;  %v799_v47 = vadd.f32 %v797_v46, %v681_v44  ;;  %v803_v55 = vsub.f32 1.0, %v1938_v51  ;;  %v807_v60 = vmul.f32 %v1938_v51, %v2426_v43 }
 0x454   :  { %1941 = vtanh.f32 %v799_v47 }
 0x45c   :  { %v1940_v53 = vpop.eup %1939 }
 0x45d   :  { %v804_v48 = vmul.f32 %v1940_v53, %v802_v52 }
 0x45e   :  { %v1942_v58 = vpop.eup %1941 }
 0x45f   :  { %v805_v59 = vmul.f32 %v1942_v58, %v803_v55  ;;  %v2469_v57 = vadd.f32 %v806_v49, %v804_v48  ;;  %v2522_v58 = vld [vmem:[#allocation5] ss:$12 sps:$4 sm:$0xff]  }
 0x461   :  { %v2471_v61 = vadd.f32 %v807_v60, %v805_v59  ;;  %v2525_v59 = vld [vmem:[#allocation5 + $0x8] ss:$12 sps:$4 sm:$0xff]  }
 0x462   :  { %v2528_v60 = vld [vmem:[#allocation5 + $0x1c] ss:$12 sps:$4 sm:$0xff]  }
 0x463   :  { %v810_v2 = vpack.c.bf16 %v2471_v61, %v2469_v57 }
 0x465   :  { %1565 = vst [vmem:[#allocation7 + $0x18] sm:$0xff] %v810_v2   ;;  %865 = vmatmul.mubr.bf16.vlgmr.msra.gmra.mrb[16].mxu0 %v810_v2  ;;  %1755 = vmatmul.mubr.bf16.vlgmr.msra.gmra.mrb[16].mxu1 %v810_v2  ;;  %v2541_v2 = vld [vmem:[#allocation5 + $0x34] ss:$12 sps:$4 sm:$0xff]  }
 0x466   :  { %983 = vmatpush1.bf16.msra.mxu0 %v2213_v3  ;;  %1759 = vmatpush3.bf16.msra.mxu1 %v2230_v9  ;;  %v2508_v3 = vld [vmem:[#allocation5 + $0x4] ss:$12 sps:$4 sm:$0xff]  }
 0x467   :  { %984 = vmatprep.subr.bf16.mxu0 %v2216_v4  ;;  %1760 = vmatprep.subr.bf16.mxu1 %v2148_v0  ;;  %v822_v4 = vld [vmem:[#allocation2 + $0x60] sm:$0xff] }
 0x468   :  { %1014 = vmatprep.mubr.bf16.mxu0 %v2149_v1  ;;  %1774 = vmatprep.mubr.msk.bf16.mxu1 %vm2150_vm0, %v2148_v0 }
 0x46a   :  { %985 = vmatpush1.bf16.msra.mxu0 %v2219_v5  ;;  %1761 = vmatpush3.bf16.msra.mxu1 %v2240_v12  ;;  %v824_v5 = vld [vmem:[#allocation2 + $0x6c] sm:$0xff] }
 0x46b   :  { %986 = vmatprep.subr.bf16.mxu0 %v2222_v6  ;;  %1762 = vmatprep.subr.bf16.mxu1 %v2148_v0  ;;  %v826_v6 = vunpack.c.l.bf16 %v822_v4 }
 0x46e   :  { %987 = vmatpush1.bf16.msra.mxu0 %v2225_v7  ;;  %1763 = vmatpush3.bf16.msra.mxu1 %v2246_v14  ;;  %v829_v7 = vunpack.c.l.bf16 %v824_v5 }
 0x46f   :  { %988 = vmatprep.subr.bf16.mxu0 %v2228_v8  ;;  %1764 = vmatprep.subr.bf16.mxu1 %v2148_v0 }
 0x472   :  { %989 = vmatpush1.bf16.msra.mxu0 %v2233_v10  ;;  %1765 = vmatpush3.bf16.msra.mxu1 %v2256_v17  ;;  %v827_v10 = vunpack.c.h.bf16 %v822_v4  ;;  %v2545_v4 = vld [vmem:[#allocation5 + $0x30] ss:$12 sps:$4 sm:$0xff]  }
 0x473   :  { %990 = vmatprep.subr.bf16.mxu0 %v2237_v11  ;;  %1766 = vmatprep.subr.bf16.mxu1 %v2148_v0 }
 0x476   :  { %991 = vmatpush1.bf16.msra.mxu0 %v2242_v13  ;;  %1767 = vmatpush3.bf16.msra.mxu1 %v2266_v20 }
 0x477   :  { %992 = vmatprep.subr.bf16.mxu0 %v2249_v15  ;;  %1768 = vmatprep.subr.bf16.mxu1 %v2148_v0 }
 0x47a   :  { %993 = vmatpush1.bf16.msra.mxu0 %v2253_v16  ;;  %1769 = vmatpush3.bf16.msra.mxu1 %v2276_v23  ;;  %v830_v16 = vunpack.c.h.bf16 %v824_v5  ;;  %v2548_v5 = vld [vmem:[#allocation5 + $0x38] ss:$12 sps:$4 sm:$0xff]  }
 0x47b   :  { %994 = vmatprep.subr.bf16.mxu0 %v2259_v18  ;;  %1770 = vmatprep.subr.bf16.mxu1 %v2148_v0 }
 0x47e   :  { %995 = vmatpush1.bf16.msra.mxu0 %v2263_v19  ;;  %1771 = vmatpush3.bf16.msra.mxu1 %v2282_v24 }
 0x47f   :  { %996 = vmatprep.subr.bf16.mxu0 %v2269_v21  ;;  %1772 = vmatprep.subr.bf16.mxu1 %v2148_v0 }
 0x482   :  { %997 = vmatpush1.bf16.msra.mxu0 %v2273_v22  ;;  %1773 = vmatpush3.bf16.msra.mxu1 %v2287_v26 }
 0x483   :  { %1132 = vmatprep.subr.bf16.mxu0 %v2508_v3  ;;  %1778 = vmatprep.subr.bf16.mxu1 %v2148_v0 }
 0x538   :  { %v866_v8 = vpop.f32.mrb[16].mxu0  ;;  %v909_v9 = vpop.f32.mrb[16].mxu1 }
 0x539   :  { %v916_v11 = vadd.f32 %v866_v8, %v826_v6  ;;  %v868_v12 = vpop.f32.mrb[17].mxu0  ;;  %v1756_v13 = vpop.f32.mrb[17].mxu1  ;;  %v944_v31 = vadd.f32 %v2330_v54, %v909_v9  ;;  %v2551_v6 = vld [vmem:[#allocation5 + $0x4c] ss:$12 sps:$4 sm:$0xff]   ;;  %v2558_v8 = vld [vmem:[#allocation5 + $0x50] ss:$12 sps:$4 sm:$0xff]  }
 0x53a   :  { %v870_v14 = vpop.f32.mrb[18].mxu0  ;;  %v912_v15 = vpop.f32.mrb[18].mxu1  ;;  %v930_v21 = vadd.f32 %v868_v12, %v827_v10  ;;  %v2561_v9 = vld [vmem:[#allocation5 + $0x64] ss:$12 sps:$4 sm:$0xff]   ;;  %v2565_v10 = vld [vmem:[#allocation5 + $0x60] ss:$12 sps:$4 sm:$0xff]  }
 0x53b   :  { %v1506_v17 = vmul.f32 -1.442695, %v916_v11  ;;  %v917_v18 = vadd.f32 %v870_v14, %v829_v7  ;;  %v872_v19 = vpop.f32.mrb[19].mxu0  ;;  %v1757_v20 = vpop.f32.mrb[19].mxu1  ;;  %v945_v29 = vadd.f32 %v2330_v54, %v912_v15  ;;  %v2555_v7 = vld [vmem:[#allocation5 + $0x48] ss:$12 sps:$4 sm:$0xff]  }
 0x53c   :  { %v931_v23 = vadd.f32 %v872_v19, %v830_v16  ;;  %v1508_v24 = vmul.f32 -1.442695, %v930_v21  ;;  %v2568_v11 = vld [vmem:[#allocation5 + $0x68] ss:$12 sps:$4 sm:$0xff]   ;;  %v2575_v13 = vld [vmem:[#allocation5 + $0x78] ss:$12 sps:$4 sm:$0xff]  }
 0x53d   :  { %1943 = vpow2.f32 %v1506_v17  ;;  %v1507_v22 = vmul.f32 -1.442695, %v917_v18  ;;  %v2571_v12 = vld [vmem:[#allocation5 + $0x7c] ss:$12 sps:$4 sm:$0xff]   ;;  %v2578_v14 = vld [vmem:[#allocation5 + $0x80] ss:$12 sps:$4 sm:$0xff]  }
 0x53e   :  { %v1509_v26 = vmul.f32 -1.442695, %v931_v23  ;;  %v2581_v15 = vld [vmem:[#allocation5 + $0x94] ss:$12 sps:$4 sm:$0xff]   ;;  %v2585_v16 = vld [vmem:[#allocation5 + $0x90] ss:$12 sps:$4 sm:$0xff]  }
 0x53f   :  { %1945 = vpow2.f32 %v1507_v22  ;;  %v2588_v17 = vld [vmem:[#allocation5 + $0x98] ss:$12 sps:$4 sm:$0xff]   ;;  %v2595_v19 = vld [vmem:[#allocation5 + $0xa8] ss:$12 sps:$4 sm:$0xff]   ;;  %v2598_v20 = vld [vmem:[#allocation5 + $0xb0] ss:$12 sps:$4 sm:$0xff]  }
 0x540   :  { %1947 = vpow2.f32 %v1508_v24  ;;  %v2591_v18 = vld [vmem:[#allocation5 + $0xac] ss:$12 sps:$4 sm:$0xff]   ;;  %v974_v22 = vld [vmem:[#allocation2 + $0x84] sm:$0xff] }
 0x541   :  { %1949 = vpow2.f32 %v1509_v26  ;;  %v972_v21 = vld [vmem:[#allocation2 + $0x78] sm:$0xff]  ;;  %v979_v24 = vunpack.c.l.bf16 %v974_v22 }
 0x542   :  { %v976_v23 = vunpack.c.l.bf16 %v972_v21 }
 0x547   :  { %v1944_v35 = vpop.eup %1943 }
 0x548   :  { %v924_v43 = vadd.f32 1.0, %v1944_v35 }
 0x549   :  { %v1946_v63 = vpop.eup %1945 }
 0x54a   :  { %1951 = vrcp.f32 %v924_v43  ;;  %v925_v41 = vadd.f32 1.0, %v1946_v63  ;;  %v1948_v42 = vpop.eup %1947  ;;  %v977_v43 = vunpack.c.h.bf16 %v972_v21  ;;  %v2607_v21 = vld [vmem:[%s2694_s2] ss:$0 sm:$0xff]  ;;  %s2152_s2 = smov [#allocation8]  }
 0x54b   :  { %v1950_v25 = vpop.eup %1949  ;;  %v938_v28 = vadd.f32 1.0, %v1948_v42  ;;  %s1440_s17 = sshll.u32 %s2152_s2, 4  ;;  %s1441_s17 = int_to_ptr.vmem [resolvable:$true] %s1440_s17 }
 0x54c   :  { %1953 = vrcp.f32 %v925_v41  ;;  %v939_v32 = vadd.f32 1.0, %v1950_v25  ;;  %s2092_s20 = scalar_lea.vmem %s1441_s17, 256  ;;  %p2097_p3 = scmp.lt.s32.totalorder %s1441_s17, %s1441_s17 }
 0x54d   :  { %1955 = vrcp.f32 %v938_v28  ;;  %v980_v28 = vunpack.c.h.bf16 %v974_v22  ;;  %p2093_p2 = scmp.ne.s32.totalorder %s1441_s17, %s2092_s20  ;;  %p2098_p4 = scmp.lt.s32.totalorder %s2092_s20, %s2092_s20 }
 0x54e   :  { %1957 = vrcp.f32 %v939_v32 }
 0x54f   :  { %p2099_p5 = por %p2098_p4, %p2097_p3 }
 0x551   :  { %p2100_p6 = pnand %p2099_p5, %p2093_p2 }
 0x554   :  { %v1952_v33 = vpop.eup %1951 }
 0x555   :  { %v946_v34 = vmul.f32 %v1952_v33, %v944_v31 }
 0x556   :  { %v1954_v37 = vpop.eup %1953 }
 0x557   :  { %v948_v38 = vadd.f32 %v946_v34, %v828_v30  ;;  %v947_v39 = vmul.f32 %v1954_v37, %v945_v29  ;;  %v1956_v44 = vpop.eup %1955 }
 0x558   :  { %v1958_v56 = vpop.eup %1957  ;;  %v952_v62 = vsub.f32 1.0, %v1956_v44  ;;  %v956_v50 = vmul.f32 %v1956_v44, %v2469_v57  ;;  %v2535_v57 = vld [vmem:[#allocation5 + $0x18] ss:$12 sps:$4 sm:$0xff]  }
 0x559   :  { %1959 = vtanh.f32 %v948_v38  ;;  %v949_v40 = vadd.f32 %v947_v39, %v831_v36  ;;  %v953_v46 = vsub.f32 1.0, %v1958_v56  ;;  %v957_v53 = vmul.f32 %v1958_v56, %v2471_v61  ;;  %v2538_v61 = vld [vmem:[#allocation5 + $0x20] ss:$12 sps:$4 sm:$0xff]  }
 0x55b   :  { %1961 = vtanh.f32 %v949_v40 }
 0x563   :  { %v1960_v45 = vpop.eup %1959 }
 0x564   :  { %v954_v47 = vmul.f32 %v1960_v45, %v952_v62  ;;  %v973_v45 = vld [vmem:[#allocation2 + $0x80] ss:$12 sps:$4 sm:$0xff]  }
 0x565   :  { %v1962_v51 = vpop.eup %1961 }
 0x566   :  { %v955_v52 = vmul.f32 %v1962_v51, %v953_v46  ;;  %v2516_v55 = vadd.f32 %v956_v50, %v954_v47  ;;  %v978_v47 = vunpack.c.l.bf16 %v973_v45 }
 0x568   :  { %v2518_v48 = vadd.f32 %v957_v53, %v955_v52 }
 0x56a   :  { %v960_v49 = vpack.c.bf16 %v2518_v48, %v2516_v55 }
 0x56c   :  { %1570 = vst [vmem:[#allocation7 + $0x20] sm:$0xff] %v960_v49   ;;  %1015 = vmatmul.mubr.bf16.vlgmr.msra.gmra.mrb[20].mxu0 %v960_v49  ;;  %1775 = vmatmul.mubr.bf16.vlgmr.msra.gmra.mrb[20].mxu1 %v960_v49  ;;  %v981_v49 = vunpack.c.h.bf16 %v973_v45 }
 0x56d   :  { %1133 = vmatpush1.bf16.msra.mxu0 %v2522_v58  ;;  %1779 = vmatpush3.bf16.msra.mxu1 %v2525_v59 }
 0x56e   :  { %1134 = vmatprep.subr.bf16.mxu0 %v2528_v60  ;;  %1780 = vmatprep.subr.bf16.mxu1 %v2148_v0 }
 0x56f   :  { %1164 = vmatprep.mubr.bf16.mxu0 %v2149_v1  ;;  %1794 = vmatprep.mubr.msk.bf16.mxu1 %vm2150_vm0, %v2148_v0 }
 0x571   :  { %1135 = vmatpush1.bf16.msra.mxu0 %v2535_v57  ;;  %1781 = vmatpush3.bf16.msra.mxu1 %v2538_v61 }
 0x572   :  { %1136 = vmatprep.subr.bf16.mxu0 %v2541_v2  ;;  %1782 = vmatprep.subr.bf16.mxu1 %v2148_v0 }
 0x575   :  { %1137 = vmatpush1.bf16.msra.mxu0 %v2545_v4  ;;  %1783 = vmatpush3.bf16.msra.mxu1 %v2548_v5 }
 0x576   :  { %1138 = vmatprep.subr.bf16.mxu0 %v2551_v6  ;;  %1784 = vmatprep.subr.bf16.mxu1 %v2148_v0 }
 0x579   :  { %1139 = vmatpush1.bf16.msra.mxu0 %v2555_v7  ;;  %1785 = vmatpush3.bf16.msra.mxu1 %v2558_v8 }
 0x57a   :  { %1140 = vmatprep.subr.bf16.mxu0 %v2561_v9  ;;  %1786 = vmatprep.subr.bf16.mxu1 %v2148_v0 }
 0x57d   :  { %1141 = vmatpush1.bf16.msra.mxu0 %v2565_v10  ;;  %1787 = vmatpush3.bf16.msra.mxu1 %v2568_v11 }
 0x57e   :  { %1142 = vmatprep.subr.bf16.mxu0 %v2571_v12  ;;  %1788 = vmatprep.subr.bf16.mxu1 %v2148_v0 }
 0x581   :  { %1143 = vmatpush1.bf16.msra.mxu0 %v2575_v13  ;;  %1789 = vmatpush3.bf16.msra.mxu1 %v2578_v14 }
 0x582   :  { %1144 = vmatprep.subr.bf16.mxu0 %v2581_v15  ;;  %1790 = vmatprep.subr.bf16.mxu1 %v2148_v0 }
 0x585   :  { %1145 = vmatpush1.bf16.msra.mxu0 %v2585_v16  ;;  %1791 = vmatpush3.bf16.msra.mxu1 %v2588_v17 }
 0x586   :  { %1146 = vmatprep.subr.bf16.mxu0 %v2591_v18  ;;  %1792 = vmatprep.subr.bf16.mxu1 %v2148_v0 }
 0x589   :  { %1147 = vmatpush1.bf16.msra.mxu0 %v2595_v19  ;;  %1793 = vmatpush3.bf16.msra.mxu1 %v2598_v20 }
 0x58a   :  { %1282 = vmatprep.subr.bf16.mxu0 %v2508_v3  ;;  %1798 = vmatprep.subr.bf16.mxu1 %v2148_v0 }
 0x63f   :  { %v1016_v26 = vpop.f32.mrb[20].mxu0  ;;  %v1059_v35 = vpop.f32.mrb[20].mxu1 }
 0x640   :  { %v1066_v63 = vadd.f32 %v1016_v26, %v976_v23  ;;  %v1018_v41 = vpop.f32.mrb[21].mxu0  ;;  %v1776_v42 = vpop.f32.mrb[21].mxu1  ;;  %v1094_v50 = vadd.f32 %v2330_v54, %v1059_v35 }
 0x641   :  { %v1020_v25 = vpop.f32.mrb[22].mxu0  ;;  %v1062_v27 = vpop.f32.mrb[22].mxu1  ;;  %v1080_v3 = vadd.f32 %v1018_v41, %v977_v43 }
 0x642   :  { %v1512_v30 = vmul.f32 -1.442695, %v1066_v63  ;;  %v1067_v31 = vadd.f32 %v1020_v25, %v979_v24  ;;  %v1022_v32 = vpop.f32.mrb[23].mxu0  ;;  %v1777_v33 = vpop.f32.mrb[23].mxu1  ;;  %v1095_v22 = vadd.f32 %v2607_v21, %v1062_v27 }
 0x643   :  { %v1081_v36 = vadd.f32 %v1022_v32, %v980_v28  ;;  %v1514_v29 = vmul.f32 -1.442695, %v1080_v3 }
 0x644   :  { %1963 = vpow2.f32 %v1512_v30  ;;  %v1513_v34 = vmul.f32 -1.442695, %v1067_v31 }
 0x645   :  { %v1515_v37 = vmul.f32 -1.442695, %v1081_v36  ;;  %v1123_v36 = vld [vmem:[#allocation2 + $0x98] ss:$12 sps:$4 sm:$0xff]  }
 0x646   :  { %1965 = vpow2.f32 %v1513_v34 }
 0x647   :  { %1967 = vpow2.f32 %v1514_v29 }
 0x648   :  { %1969 = vpow2.f32 %v1515_v37  ;;  %v1128_v37 = vunpack.c.l.bf16 %v1123_v36 }
 0x64e   :  { %v1964_v38 = vpop.eup %1963 }
 0x64f   :  { %v1074_v39 = vadd.f32 1.0, %v1964_v38 }
 0x650   :  { %v1966_v40 = vpop.eup %1965 }
 0x651   :  { %1971 = vrcp.f32 %v1074_v39  ;;  %v1075_v44 = vadd.f32 1.0, %v1966_v40  ;;  %v1968_v56 = vpop.eup %1967 }
 0x652   :  { %v1970_v62 = vpop.eup %1969  ;;  %v1088_v46 = vadd.f32 1.0, %v1968_v56  ;;  %v1131_v56 = vunpack.c.h.bf16 %v1123_v36 }
 0x653   :  { %1973 = vrcp.f32 %v1075_v44  ;;  %v1089_v51 = vadd.f32 1.0, %v1970_v62 }
 0x654   :  { %1975 = vrcp.f32 %v1088_v46 }
 0x655   :  { %1977 = vrcp.f32 %v1089_v51 }
 0x65b   :  { %v1972_v52 = vpop.eup %1971 }
 0x65c   :  { %v1096_v53 = vmul.f32 %v1972_v52, %v1094_v50 }
 0x65d   :  { %v1974_v23 = vpop.eup %1973 }
 0x65e   :  { %v1098_v24 = vadd.f32 %v1096_v53, %v978_v47  ;;  %v1097_v26 = vmul.f32 %v1974_v23, %v1095_v22  ;;  %v1976_v54 = vpop.eup %1975 }
 0x65f   :  { %v1978_v35 = vpop.eup %1977  ;;  %v1102_v63 = vsub.f32 1.0, %v1976_v54  ;;  %v1106_v28 = vmul.f32 %v1976_v54, %v2516_v55  ;;  %v1124_v55 = vld [vmem:[#allocation2 + $0x9c] sm:$0xff] }
 0x660   :  { %1979 = vtanh.f32 %v1098_v24  ;;  %v1099_v43 = vadd.f32 %v1097_v26, %v981_v49  ;;  %v1103_v42 = vsub.f32 1.0, %v1978_v35  ;;  %v1107_v32 = vmul.f32 %v1978_v35, %v2518_v48 }
 0x662   :  { %1981 = vtanh.f32 %v1099_v43 }
 0x66a   :  { %v1980_v41 = vpop.eup %1979 }
 0x66b   :  { %v1104_v25 = vmul.f32 %v1980_v41, %v1102_v63 }
 0x66c   :  { %v1982_v30 = vpop.eup %1981 }
 0x66d   :  { %v1105_v31 = vmul.f32 %v1982_v30, %v1103_v42  ;;  %v2612_v27 = vadd.f32 %v1106_v28, %v1104_v25  ;;  %v1272_v42 = vld [vmem:[#allocation2 + $0xa8] sm:$0xff]  ;;  %v1274_v25 = vld [vmem:[#allocation2 + $0xb4] sm:$0xff] }
 0x66e   :  { %v1276_v28 = vunpack.c.l.bf16 %v1272_v42  ;;  %v1279_v30 = vunpack.c.l.bf16 %v1274_v25 }
 0x66f   :  { %v2614_v33 = vadd.f32 %v1107_v32, %v1105_v31 }
 0x671   :  { %v1110_v3 = vpack.c.bf16 %v2614_v33, %v2612_v27 }
 0x673   :  { %1575 = vst [vmem:[#allocation7 + $0x28] sm:$0xff] %v1110_v3   ;;  %1165 = vmatmul.mubr.bf16.vlgmr.msra.gmra.mrb[24].mxu0 %v1110_v3  ;;  %1795 = vmatmul.mubr.bf16.vlgmr.msra.gmra.mrb[24].mxu1 %v1110_v3  ;;  %v1277_v3 = vunpack.c.h.bf16 %v1272_v42 }
 0x674   :  { %1283 = vmatpush1.bf16.msra.mxu0 %v2522_v58  ;;  %1799 = vmatpush3.bf16.msra.mxu1 %v2525_v59  ;;  %v1129_v58 = vunpack.c.l.bf16 %v1124_v55 }
 0x675   :  { %1284 = vmatprep.subr.bf16.mxu0 %v2528_v60  ;;  %1800 = vmatprep.subr.bf16.mxu1 %v2148_v0 }
 0x676   :  { %1314 = vmatprep.mubr.bf16.mxu0 %v2149_v1  ;;  %1814 = vmatprep.mubr.msk.bf16.mxu1 %vm2150_vm0, %v2148_v0  ;;  %v1122_v1 = vld [vmem:[#allocation2 + $0x90] sm:$0xff] }
 0x677   :  { %v1126_v48 = vunpack.c.l.bf16 %v1122_v1 }
 0x678   :  { %1285 = vmatpush1.bf16.msra.mxu0 %v2535_v57  ;;  %1801 = vmatpush3.bf16.msra.mxu1 %v2538_v61  ;;  %v1127_v57 = vunpack.c.h.bf16 %v1122_v1 }
 0x679   :  { %1286 = vmatprep.subr.bf16.mxu0 %v2541_v2  ;;  %1802 = vmatprep.subr.bf16.mxu1 %v2148_v0 }
 0x67c   :  { %1287 = vmatpush1.bf16.msra.mxu0 %v2545_v4  ;;  %1803 = vmatpush3.bf16.msra.mxu1 %v2548_v5 }
 0x67d   :  { %1288 = vmatprep.subr.bf16.mxu0 %v2551_v6  ;;  %1804 = vmatprep.subr.bf16.mxu1 %v2148_v0 }
 0x680   :  { %1289 = vmatpush1.bf16.msra.mxu0 %v2555_v7  ;;  %1805 = vmatpush3.bf16.msra.mxu1 %v2558_v8  ;;  %v1130_v7 = vunpack.c.h.bf16 %v1124_v55 }
 0x681   :  { %1290 = vmatprep.subr.bf16.mxu0 %v2561_v9  ;;  %1806 = vmatprep.subr.bf16.mxu1 %v2148_v0 }
 0x684   :  { %1291 = vmatpush1.bf16.msra.mxu0 %v2565_v10  ;;  %1807 = vmatpush3.bf16.msra.mxu1 %v2568_v11 }
 0x685   :  { %1292 = vmatprep.subr.bf16.mxu0 %v2571_v12  ;;  %1808 = vmatprep.subr.bf16.mxu1 %v2148_v0 }
 0x688   :  { %1293 = vmatpush1.bf16.msra.mxu0 %v2575_v13  ;;  %1809 = vmatpush3.bf16.msra.mxu1 %v2578_v14 }
 0x689   :  { %1294 = vmatprep.subr.bf16.mxu0 %v2581_v15  ;;  %1810 = vmatprep.subr.bf16.mxu1 %v2148_v0 }
 0x68c   :  { %1295 = vmatpush1.bf16.msra.mxu0 %v2585_v16  ;;  %1811 = vmatpush3.bf16.msra.mxu1 %v2588_v17 }
 0x68d   :  { %1296 = vmatprep.subr.bf16.mxu0 %v2591_v18  ;;  %1812 = vmatprep.subr.bf16.mxu1 %v2148_v0 }
 0x690   :  { %1297 = vmatpush1.bf16.msra.mxu0 %v2595_v19  ;;  %1813 = vmatpush3.bf16.msra.mxu1 %v2598_v20 }
 0x746   :  { %v1166_v59 = vpop.f32.mrb[24].mxu0  ;;  %v1209_v60 = vpop.f32.mrb[24].mxu1 }
 0x747   :  { %v1216_v61 = vadd.f32 %v1166_v59, %v1126_v48  ;;  %v1168_v2 = vpop.f32.mrb[25].mxu0  ;;  %v1796_v4 = vpop.f32.mrb[25].mxu1  ;;  %v1244_v38 = vadd.f32 %v2607_v21, %v1209_v60 }
 0x748   :  { %v1170_v5 = vpop.f32.mrb[26].mxu0  ;;  %v1212_v6 = vpop.f32.mrb[26].mxu1  ;;  %v1230_v11 = vadd.f32 %v1168_v2, %v1127_v57 }
 0x749   :  { %v1518_v8 = vmul.f32 -1.442695, %v1216_v61  ;;  %v1217_v9 = vadd.f32 %v1170_v5, %v1129_v58  ;;  %v1172_v0 = vpop.f32.mrb[27].mxu0  ;;  %v1797_v10 = vpop.f32.mrb[27].mxu1  ;;  %v1245_v62 = vadd.f32 %v2607_v21, %v1212_v6  ;;  %v1280_v58 = vunpack.c.h.bf16 %v1274_v25 }
 0x74a   :  { %v1231_v13 = vadd.f32 %v1172_v0, %v1130_v7  ;;  %v1520_v14 = vmul.f32 -1.442695, %v1230_v11 }
 0x74b   :  { %1983 = vpow2.f32 %v1518_v8  ;;  %v1519_v12 = vmul.f32 -1.442695, %v1217_v9 }
 0x74c   :  { %v1521_v15 = vmul.f32 -1.442695, %v1231_v13  ;;  %v1273_v13 = vld [vmem:[#allocation2 + $0xb0] ss:$12 sps:$4 sm:$0xff]  }
 0x74d   :  { %1985 = vpow2.f32 %v1519_v12 }
 0x74e   :  { %1987 = vpow2.f32 %v1520_v14 }
 0x74f   :  { %1989 = vpow2.f32 %v1521_v15  ;;  %v1278_v15 = vunpack.c.l.bf16 %v1273_v13 }
 0x755   :  { %v1984_v16 = vpop.eup %1983 }
 0x756   :  { %v1224_v17 = vadd.f32 1.0, %v1984_v16 }
 0x757   :  { %v1986_v18 = vpop.eup %1985 }
 0x758   :  { %1991 = vrcp.f32 %v1224_v17  ;;  %v1225_v19 = vadd.f32 1.0, %v1986_v18  ;;  %v1988_v20 = vpop.eup %1987 }
 0x759   :  { %v1990_v34 = vpop.eup %1989  ;;  %v1238_v29 = vadd.f32 1.0, %v1988_v20  ;;  %v1281_v20 = vunpack.c.h.bf16 %v1273_v13 }
 0x75a   :  { %1993 = vrcp.f32 %v1225_v19  ;;  %v1239_v39 = vadd.f32 1.0, %v1990_v34 }
 0x75b   :  { %1995 = vrcp.f32 %v1238_v29 }
 0x75c   :  { %1997 = vrcp.f32 %v1239_v39 }
 0x762   :  { %v1992_v40 = vpop.eup %1991 }
 0x763   :  { %v1246_v44 = vmul.f32 %v1992_v40, %v1244_v38 }
 0x764   :  { %v1994_v45 = vpop.eup %1993 }
 0x765   :  { %v1248_v46 = vadd.f32 %v1246_v44, %v1128_v37  ;;  %v1247_v47 = vmul.f32 %v1994_v45, %v1245_v62  ;;  %v1996_v51 = vpop.eup %1995 }
 0x766   :  { %v1998_v52 = vpop.eup %1997  ;;  %v1252_v53 = vsub.f32 1.0, %v1996_v51  ;;  %v1256_v24 = vmul.f32 %v1996_v51, %v2612_v27 }
 0x767   :  { %1999 = vtanh.f32 %v1248_v46  ;;  %v1249_v50 = vadd.f32 %v1247_v47, %v1131_v56  ;;  %v1253_v22 = vsub.f32 1.0, %v1998_v52  ;;  %v1257_v54 = vmul.f32 %v1998_v52, %v2614_v33 }
 0x769   :  { %2001 = vtanh.f32 %v1249_v50 }
 0x771   :  { %v2000_v49 = vpop.eup %1999 }
 0x772   :  { %v1254_v23 = vmul.f32 %v2000_v49, %v1252_v53 }
 0x773   :  { %v2002_v26 = vpop.eup %2001 }
 0x774   :  { %v1255_v43 = vmul.f32 %v2002_v26, %v1253_v22  ;;  %v1258_v35 = vadd.f32 %v1256_v24, %v1254_v23 }
 0x776   :  { %v2655_v63 = vadd.f32 %v1257_v54, %v1255_v43 }
 0x778   :  { %v1260_v41 = vpack.c.bf16 %v2655_v63, %v1258_v35 }
 0x77a   :  { %1580 = vst [vmem:[#allocation7 + $0x30] sm:$0xff] %v1260_v41   ;;  %1315 = vmatmul.mubr.bf16.vlgmr.msra.gmra.mrb[28].mxu0 %v1260_v41  ;;  %1815 = vmatmul.mubr.bf16.vlgmr.msra.gmra.mrb[28].mxu1 %v1260_v41 }
 0x84d   :  { %v1316_v31 = vpop.f32.mrb[28].mxu0  ;;  %v1359_v32 = vpop.f32.mrb[28].mxu1 }
 0x84e   :  { %v1366_v27 = vadd.f32 %v1316_v31, %v1276_v28  ;;  %v1318_v1 = vpop.f32.mrb[29].mxu0  ;;  %v1816_v55 = vpop.f32.mrb[29].mxu1  ;;  %v1394_v16 = vadd.f32 %v2607_v21, %v1359_v32 }
 0x84f   :  { %v1320_v48 = vpop.f32.mrb[30].mxu0  ;;  %v1362_v33 = vpop.f32.mrb[30].mxu1  ;;  %v1380_v2 = vadd.f32 %v1318_v1, %v1277_v3 }
 0x850   :  { %v1524_v59 = vmul.f32 -1.442695, %v1366_v27  ;;  %v1367_v60 = vadd.f32 %v1320_v48, %v1279_v30  ;;  %v1322_v57 = vpop.f32.mrb[31].mxu0  ;;  %v1817_v61 = vpop.f32.mrb[31].mxu1  ;;  %v1395_v34 = vadd.f32 %v2607_v21, %v1362_v33 }
 0x851   :  { %v1381_v5 = vadd.f32 %v1322_v57, %v1280_v58  ;;  %v1526_v6 = vmul.f32 -1.442695, %v1380_v2 }
 0x852   :  { %2003 = vpow2.f32 %v1524_v59  ;;  %v1525_v4 = vmul.f32 -1.442695, %v1367_v60 }
 0x853   :  { %v1527_v7 = vmul.f32 -1.442695, %v1381_v5 }
 0x854   :  { %2005 = vpow2.f32 %v1525_v4 }
 0x855   :  { %2007 = vpow2.f32 %v1526_v6 }
 0x856   :  { %2009 = vpow2.f32 %v1527_v7 }
 0x85c   :  { %v2004_v8 = vpop.eup %2003 }
 0x85d   :  { %v1374_v9 = vadd.f32 1.0, %v2004_v8 }
 0x85e   :  { %v2006_v0 = vpop.eup %2005 }
 0x85f   :  { %2011 = vrcp.f32 %v1374_v9  ;;  %v1375_v10 = vadd.f32 1.0, %v2006_v0  ;;  %v2008_v11 = vpop.eup %2007 }
 0x860   :  { %v2010_v12 = vpop.eup %2009  ;;  %v1388_v14 = vadd.f32 1.0, %v2008_v11 }
 0x861   :  { %2013 = vrcp.f32 %v1375_v10  ;;  %v1389_v17 = vadd.f32 1.0, %v2010_v12 }
 0x862   :  { %2015 = vrcp.f32 %v1388_v14 }
 0x863   :  { %2017 = vrcp.f32 %v1389_v17 }
 0x869   :  { %v2012_v18 = vpop.eup %2011 }
 0x86a   :  { %v1396_v19 = vmul.f32 %v2012_v18, %v1394_v16 }
 0x86b   :  { %v2014_v36 = vpop.eup %2013 }
 0x86c   :  { %v1398_v29 = vadd.f32 %v1396_v19, %v1278_v15  ;;  %v1397_v37 = vmul.f32 %v2014_v36, %v1395_v34  ;;  %v2016_v39 = vpop.eup %2015 }
 0x86d   :  { %v2018_v40 = vpop.eup %2017  ;;  %v1402_v44 = vsub.f32 1.0, %v2016_v39  ;;  %v1406_v45 = vmul.f32 %v2016_v39, %v1258_v35 }
 0x86e   :  { %2019 = vtanh.f32 %v1398_v29  ;;  %v1399_v38 = vadd.f32 %v1397_v37, %v1281_v20  ;;  %v1403_v46 = vsub.f32 1.0, %v2018_v40  ;;  %v1407_v21 = vmul.f32 %v2018_v40, %v2655_v63 }
 0x870   :  { %2021 = vtanh.f32 %v1399_v38 }
 0x878   :  { %v2020_v56 = vpop.eup %2019 }
 0x879   :  { %v1404_v62 = vmul.f32 %v2020_v56, %v1402_v44 }
 0x87a   :  { %v2022_v47 = vpop.eup %2021 }
 0x87b   :  { %v1408_v50 = vadd.f32 %v1406_v45, %v1404_v62  ;;  %v1405_v51 = vmul.f32 %v2022_v47, %v1403_v46 }
 0x87d   :  { %1421 = vst [vmem:[#allocation8] sm:$0xff] %v1408_v50  ;;  %v1409_v52 = vadd.f32 %v1407_v21, %v1405_v51 }
 0x87f   :  { %v1584_v53 = vpack.c.bf16 %v1409_v52, %v1408_v50  ;;  %1422 = vst [vmem:[#allocation8 + $0x8] sm:$0xff] %v1409_v52 }
 0x880   :  { %2103 = shalt.err (!%p2100_p6)
}
 0x881   :  { %s2104_s23 = scalar_lea.hbm %s2696_s4, 256 }
 0x882   :  { %p2105_p7 = scmp.ne.s32.totalorder %s2696_s4, %s2104_s23  ;;  %p2108_p8 = scmp.lt.u32.totalorder %s2104_s23, %s2696_s4 }
 0x884   :  { %p2110_p9 = pnand %p2108_p8, %p2105_p7 }
 0x886   :  { %2113 = shalt.err (!%p2110_p9)
}
 0x887   :  { %s2154_s28 = smov 128   ;;  %s2155_s29 = smov 8   ;;  %1585 = vst [vmem:[#allocation7 + $0x38] sm:$0xff] %v1584_v53  }
 0x888   :  { %1446 = dma.vmem_to_hbm [thread:$0]  %s1441_s17, 256, %s2696_s4, [#allocation9], %s2154_s28, %s2154_s28, %s2155_s29  }
 0x889   :  { %s2114_s6 = scalar_lea.vmem %s2661_s19, 1024  ;;  %p2119_p11 = scmp.lt.s32.totalorder %s2661_s19, %s2661_s19 }
 0x88a   :  { %p2115_p10 = scmp.ne.s32.totalorder %s2661_s19, %s2114_s6  ;;  %p2120_p12 = scmp.lt.s32.totalorder %s2114_s6, %s2114_s6 }
 0x88c   :  { %p2121_p13 = por %p2120_p12, %p2119_p11 }
 0x88e   :  { %p2122_p0 = pnand %p2121_p13, %p2115_p10 }
 0x890   :  { %2125 = shalt.err (!%p2122_p0)
}
 0x891   :  { %s2126_s9 = scalar_lea.hbm %s2695_s3, 1024 }
 0x892   :  { %p2127_p1 = scmp.ne.s32.totalorder %s2695_s3, %s2126_s9  ;;  %p2130_p2 = scmp.lt.u32.totalorder %s2126_s9, %s2695_s3 }
 0x894   :  { %p2132_p3 = pnand %p2130_p2, %p2127_p1 }
 0x896   :  { %2135 = shalt.err (!%p2132_p3)
}
 0x897   :  { %s2156_s4 = smov 64   ;;  %s2157_s13 = smov 4  }
 0x898   :  { %1434 = dma.vmem_to_hbm [thread:$0]  %s2661_s19, 1024, %s2695_s3, [#allocation4], %s2156_s4, %s2156_s4, %s2157_s13  }
 0x899   :  { %2140 = dma.done.wait [#allocation4], 1024  }
 0x89a   :  { %2141 = vsyncadd [#allocation4], 4294966272 }
 0x89b   :  { %2142 = dma.done.wait [#allocation9], 256  }
 0x89c   :  { %2143 = vsyncadd [#allocation9], 4294967040 }
 0x89d   :  { %1453 = vsyncpa [#allocation3], 1 }
 0x89e   :  { %1454 = vsyncpa [#allocation6], 1 }
 0x89f   :  { %1455 = vsyncpa [#allocation4], 1 }
 0x8a0   :  { %1456 = vsyncpa [#allocation9], 1 }

</bundles_post_ra>
